<compile_context>
chip_gen: v7x
topology: tpu7x:2x2x1
jax: 0.10.0
libtpu: 0.0.40
codegen_flags: <defaults>
</compile_context>

<pallas_src>
import functools
import math

import jax
import jax.numpy as jnp
from jax.experimental import pallas as pl
from jax.experimental.pallas import tpu as pltpu


# ----------------------------- fused decoder-layer kernel -----------------------------

def _decoder_layer_kernel(
    x_ref, m_ref,
    # self-attention params
    w_qkv_ref, b_qkv_ref, w_os_ref, b_os_ref, g1_ref, be1_ref,
    # cross-attention params
    w_qc_ref, b_qc_ref, w_kvc_ref, b_kvc_ref, w_oc_ref, b_oc_ref, g2_ref, be2_ref,
    # feed-forward params
    w1_ref, bf1_ref, w2_ref, bf2_ref, g3_ref, be3_ref,
    # output
    o_ref,
    *, nhead, eps=1e-5):
    f32 = jnp.float32
    x = x_ref[...].astype(f32)      # (T, E)  rows of one batch element
    mem = m_ref[...].astype(f32)    # (S, E)
    T, E = x.shape
    S = mem.shape[0]
    hd = E // nhead
    scale = 1.0 / math.sqrt(hd)

    # lane-index row used to build per-head column masks (keeps all matmuls full-width,
    # avoids narrow lane slices / concatenations).
    col = jax.lax.broadcasted_iota(jnp.int32, (1, E), 1)

    def head_mask(h):
        return ((col >= h * hd) & (col < (h + 1) * hd)).astype(f32)   # (1, E)

    def mha(q, k, v):
        # q: (Tq, E); k, v: (Sk, E). Per-head attention via column masks, accumulated
        # directly into a lane-dense (Tq, E) slab.
        acc = jnp.zeros((q.shape[0], E), f32)
        for h in range(nhead):
            m_h = head_mask(h)
            s = jax.lax.dot_general(q * m_h, k, (((1,), (1,)), ((), ())),
                                    preferred_element_type=f32) * scale     # (Tq, Sk)
            s = s - jnp.max(s, axis=-1, keepdims=True)
            p = jnp.exp(s)
            p = p * pl.reciprocal(jnp.sum(p, axis=-1, keepdims=True), approx=True)
            acc = acc + jnp.dot(p, v * m_h, preferred_element_type=f32)     # (Tq, E)
        return acc

    def layer_norm(z, g, b):
        mu = jnp.mean(z, axis=-1, keepdims=True)
        var = jnp.mean(jnp.square(z - mu), axis=-1, keepdims=True)
        return (z - mu) * jax.lax.rsqrt(var + eps) * g + b

    # ---- self-attention block (fused QKV projection) ----
    qkv = jnp.dot(x, w_qkv_ref[...], preferred_element_type=f32) + b_qkv_ref[...]  # (T, 3E)
    attn = mha(qkv[:, :E], qkv[:, E:2 * E], qkv[:, 2 * E:])
    attn = jnp.dot(attn, w_os_ref[...], preferred_element_type=f32) + b_os_ref[...]
    x = layer_norm(x + attn, g1_ref[...], be1_ref[...])

    # ---- cross-attention block (fused KV projection) ----
    q = jnp.dot(x, w_qc_ref[...], preferred_element_type=f32) + b_qc_ref[...]       # (T, E)
    kv = jnp.dot(mem, w_kvc_ref[...], preferred_element_type=f32) + b_kvc_ref[...]  # (S, 2E)
    attn = mha(q, kv[:, :E], kv[:, E:])
    attn = jnp.dot(attn, w_oc_ref[...], preferred_element_type=f32) + b_oc_ref[...]
    x = layer_norm(x + attn, g2_ref[...], be2_ref[...])

    # ---- feed-forward block (relu) ----
    h = jnp.maximum(jnp.dot(x, w1_ref[...], preferred_element_type=f32) + bf1_ref[...], 0.0)
    y = jnp.dot(h, w2_ref[...], preferred_element_type=f32) + bf2_ref[...]
    x = layer_norm(x + y, g3_ref[...], be3_ref[...])

    o_ref[...] = x.astype(o_ref.dtype)


# --------------------------------- wrapper ---------------------------------

def transformer_decoder_layer(tgt, memory, params, nhead):
    """Forward of TransformerDecoderLayer (self_attn=True, siamese=False, no masks,
    dropout in eval mode => identity).  tgt: (T, B, E), memory: (S, B, E) -> (T, B, E)."""
    T, B, E = tgt.shape
    S = memory.shape[0]

    # one-time boundary relayout: seq-major (T, B, E) -> batch-major 2-D slab (B*T, E)
    x2d = jnp.transpose(tgt, (1, 0, 2)).reshape(B * T, E)
    m2d = jnp.transpose(memory, (1, 0, 2)).reshape(B * S, E)

    sa = params["self_attn"]
    ca = params["cross_attn"]
    weight_args = (
        sa["w_qkv"], sa["b_qkv"], sa["w_o"], sa["b_o"],
        params["norm1_g"], params["norm1_b"],
        ca["w_q"], ca["b_q"], ca["w_kv"], ca["b_kv"], ca["w_o"], ca["b_o"],
        params["norm2_g"], params["norm2_b"],
        params["linear1_w"], params["linear1_b"],
        params["linear2_w"], params["linear2_b"],
        params["norm3_g"], params["norm3_b"],
    )

    in_specs = [
        pl.BlockSpec((T, E), lambda b: (b, 0)),   # tgt rows of batch b
        pl.BlockSpec((S, E), lambda b: (b, 0)),   # memory rows of batch b
    ] + [pl.BlockSpec(w.shape, lambda b: (0, 0)) for w in weight_args]

    out = pl.pallas_call(
        functools.partial(_decoder_layer_kernel, nhead=nhead),
        grid=(B,),
        in_specs=in_specs,
        out_specs=pl.BlockSpec((T, E), lambda b: (b, 0)),
        out_shape=jax.ShapeDtypeStruct((B * T, E), jnp.float32),
        compiler_params=pltpu.CompilerParams(dimension_semantics=("parallel",)),
    )(x2d, m2d, *weight_args)

    return jnp.transpose(out.reshape(B, T, E), (1, 0, 2))


# ----------------------------- pure-JAX reference -----------------------------

def _ref_mha(q, k, v, w_o, b_o, nhead):
    Tq, B, E = q.shape
    Sk = k.shape[0]
    hd = E // nhead
    qh = q.reshape(Tq, B, nhead, hd)
    kh = k.reshape(Sk, B, nhead, hd)
    vh = v.reshape(Sk, B, nhead, hd)
    s = jnp.einsum("tbhd,sbhd->bhts", qh, kh) / math.sqrt(hd)
    p = jax.nn.softmax(s, axis=-1)
    o = jnp.einsum("bhts,sbhd->tbhd", p, vh).reshape(Tq, B, E)
    return o @ w_o + b_o


def _ref_ln(z, g, b, eps=1e-5):
    mu = jnp.mean(z, axis=-1, keepdims=True)
    var = jnp.mean((z - mu) ** 2, axis=-1, keepdims=True)
    return (z - mu) / jnp.sqrt(var + eps) * g + b


def reference_decoder_layer(tgt, memory, params, nhead):
    E = tgt.shape[-1]
    sa, ca = params["self_attn"], params["cross_attn"]
    qkv = tgt @ sa["w_qkv"] + sa["b_qkv"]
    a = _ref_mha(qkv[..., :E], qkv[..., E:2 * E], qkv[..., 2 * E:], sa["w_o"], sa["b_o"], nhead)
    x = _ref_ln(tgt + a, params["norm1_g"], params["norm1_b"])

    q = x @ ca["w_q"] + ca["b_q"]
    kv = memory @ ca["w_kv"] + ca["b_kv"]
    a = _ref_mha(q, kv[..., :E], kv[..., E:], ca["w_o"], ca["b_o"], nhead)
    x = _ref_ln(x + a, params["norm2_g"], params["norm2_b"])

    h = jax.nn.relu(x @ params["linear1_w"] + params["linear1_b"])
    y = h @ params["linear2_w"] + params["linear2_b"]
    return _ref_ln(x + y, params["norm3_g"], params["norm3_b"])


# ------------------------------ parameter init ------------------------------

def init_params(key, d_model, nhead, dim_feedforward):
    E, FF = d_model, dim_feedforward
    ks = jax.random.split(key, 7)

    def w(k, shape):
        return 0.02 * jax.random.normal(k, shape, jnp.float32)

    return {
        "self_attn": {
            "w_qkv": w(ks[0], (E, 3 * E)), "b_qkv": jnp.zeros((1, 3 * E), jnp.float32),
            "w_o": w(ks[1], (E, E)), "b_o": jnp.zeros((1, E), jnp.float32),
        },
        "cross_attn": {
            "w_q": w(ks[2], (E, E)), "b_q": jnp.zeros((1, E), jnp.float32),
            "w_kv": w(ks[3], (E, 2 * E)), "b_kv": jnp.zeros((1, 2 * E), jnp.float32),
            "w_o": w(ks[4], (E, E)), "b_o": jnp.zeros((1, E), jnp.float32),
        },
        "linear1_w": w(ks[5], (E, FF)), "linear1_b": jnp.zeros((1, FF), jnp.float32),
        "linear2_w": w(ks[6], (FF, E)), "linear2_b": jnp.zeros((1, E), jnp.float32),
        "norm1_g": jnp.ones((1, E), jnp.float32), "norm1_b": jnp.zeros((1, E), jnp.float32),
        "norm2_g": jnp.ones((1, E), jnp.float32), "norm2_b": jnp.zeros((1, E), jnp.float32),
        "norm3_g": jnp.ones((1, E), jnp.float32), "norm3_b": jnp.zeros((1, E), jnp.float32),
    }


# ----------------------------------- main -----------------------------------

if __name__ == "__main__":
    d_model = 32
    nhead = 4
    dim_feedforward = 64
    T, S, B = 8, 8, 2

    key = jax.random.PRNGKey(0)
    kp, kt, km = jax.random.split(key, 3)
    params = init_params(kp, d_model, nhead, dim_feedforward)

    tgt = jax.random.normal(kt, (T, B, d_model), jnp.float32)
    memory = jax.random.normal(km, (S, B, d_model), jnp.float32)

    fwd = jax.jit(functools.partial(transformer_decoder_layer, nhead=nhead))
    out = jax.block_until_ready(fwd(tgt, memory, params))

    assert out.shape == (T, B, d_model)
    assert bool(jnp.all(jnp.isfinite(out)))

    # numerical sanity check against a pure-JAX reference (loose tolerance covers the
    # approx-reciprocal softmax and MXU rounding)
    ref = reference_decoder_layer(tgt, memory, params, nhead)
    err = float(jnp.max(jnp.abs(out - ref)))
    assert err < 5e-2, f"max abs error vs reference: {err}"

    print("KERNEL_OK")
</pallas_src>

<mosaic_0001>
module attributes {stable_mosaic.version = 11 : i64} {
  func.func @_decoder_layer_kernel(%arg0: i32, %arg1: memref<8x32xf32, #tpu.memory_space<vmem>>, %arg2: memref<8x32xf32, #tpu.memory_space<vmem>>, %arg3: memref<32x96xf32, #tpu.memory_space<vmem>>, %arg4: memref<1x96xf32, #tpu.memory_space<vmem>>, %arg5: memref<32x32xf32, #tpu.memory_space<vmem>>, %arg6: memref<1x32xf32, #tpu.memory_space<vmem>>, %arg7: memref<1x32xf32, #tpu.memory_space<vmem>>, %arg8: memref<1x32xf32, #tpu.memory_space<vmem>>, %arg9: memref<32x32xf32, #tpu.memory_space<vmem>>, %arg10: memref<1x32xf32, #tpu.memory_space<vmem>>, %arg11: memref<32x64xf32, #tpu.memory_space<vmem>>, %arg12: memref<1x64xf32, #tpu.memory_space<vmem>>, %arg13: memref<32x32xf32, #tpu.memory_space<vmem>>, %arg14: memref<1x32xf32, #tpu.memory_space<vmem>>, %arg15: memref<1x32xf32, #tpu.memory_space<vmem>>, %arg16: memref<1x32xf32, #tpu.memory_space<vmem>>, %arg17: memref<32x64xf32, #tpu.memory_space<vmem>>, %arg18: memref<1x64xf32, #tpu.memory_space<vmem>>, %arg19: memref<64x32xf32, #tpu.memory_space<vmem>>, %arg20: memref<1x32xf32, #tpu.memory_space<vmem>>, %arg21: memref<1x32xf32, #tpu.memory_space<vmem>>, %arg22: memref<1x32xf32, #tpu.memory_space<vmem>>, %arg23: memref<8x32xf32, #tpu.memory_space<vmem>>) attributes {dimension_semantics = [#tpu.dimension_semantics<parallel>], iteration_bounds = array<i64: 2>, scalar_prefetch = 0 : i64, scratch_operands = 0 : i64, tpu.core_type = #tpu.core_type<tc>, window_params = [{transform_indices = @transform_0, window_bounds = array<i64: 8, 32>}, {transform_indices = @transform_1, window_bounds = array<i64: 8, 32>}, {pipeline_mode = #tpu.pipeline_mode<synchronous>, transform_indices = @transform_2, window_bounds = array<i64: 32, 96>}, {pipeline_mode = #tpu.pipeline_mode<synchronous>, transform_indices = @transform_3, window_bounds = array<i64: 1, 96>}, {pipeline_mode = #tpu.pipeline_mode<synchronous>, transform_indices = @transform_4, window_bounds = array<i64: 32, 32>}, {pipeline_mode = #tpu.pipeline_mode<synchronous>, transform_indices = @transform_5, window_bounds = array<i64: 1, 32>}, {pipeline_mode = #tpu.pipeline_mode<synchronous>, transform_indices = @transform_6, window_bounds = array<i64: 1, 32>}, {pipeline_mode = #tpu.pipeline_mode<synchronous>, transform_indices = @transform_7, window_bounds = array<i64: 1, 32>}, {pipeline_mode = #tpu.pipeline_mode<synchronous>, transform_indices = @transform_8, window_bounds = array<i64: 32, 32>}, {pipeline_mode = #tpu.pipeline_mode<synchronous>, transform_indices = @transform_9, window_bounds = array<i64: 1, 32>}, {pipeline_mode = #tpu.pipeline_mode<synchronous>, transform_indices = @transform_10, window_bounds = array<i64: 32, 64>}, {pipeline_mode = #tpu.pipeline_mode<synchronous>, transform_indices = @transform_11, window_bounds = array<i64: 1, 64>}, {pipeline_mode = #tpu.pipeline_mode<synchronous>, transform_indices = @transform_12, window_bounds = array<i64: 32, 32>}, {pipeline_mode = #tpu.pipeline_mode<synchronous>, transform_indices = @transform_13, window_bounds = array<i64: 1, 32>}, {pipeline_mode = #tpu.pipeline_mode<synchronous>, transform_indices = @transform_14, window_bounds = array<i64: 1, 32>}, {pipeline_mode = #tpu.pipeline_mode<synchronous>, transform_indices = @transform_15, window_bounds = array<i64: 1, 32>}, {pipeline_mode = #tpu.pipeline_mode<synchronous>, transform_indices = @transform_16, window_bounds = array<i64: 32, 64>}, {pipeline_mode = #tpu.pipeline_mode<synchronous>, transform_indices = @transform_17, window_bounds = array<i64: 1, 64>}, {pipeline_mode = #tpu.pipeline_mode<synchronous>, transform_indices = @transform_18, window_bounds = array<i64: 64, 32>}, {pipeline_mode = #tpu.pipeline_mode<synchronous>, transform_indices = @transform_19, window_bounds = array<i64: 1, 32>}, {pipeline_mode = #tpu.pipeline_mode<synchronous>, transform_indices = @transform_20, window_bounds = array<i64: 1, 32>}, {pipeline_mode = #tpu.pipeline_mode<synchronous>, transform_indices = @transform_21, window_bounds = array<i64: 1, 32>}, {transform_indices = @transform_22, window_bounds = array<i64: 8, 32>}]} {
    %c0 = arith.constant 0 : index
    %c0_0 = arith.constant 0 : index
    %0 = vector.load %arg1[%c0, %c0_0] : memref<8x32xf32, #tpu.memory_space<vmem>>, vector<8x32xf32>
    %c0_1 = arith.constant 0 : index
    %c0_2 = arith.constant 0 : index
    %1 = vector.load %arg2[%c0_1, %c0_2] : memref<8x32xf32, #tpu.memory_space<vmem>>, vector<8x32xf32>
    %2 = tpu.iota {dimensions = array<i32: 1>} : vector<1x32xi32>
    %c0_3 = arith.constant 0 : index
    %c0_4 = arith.constant 0 : index
    %3 = vector.load %arg3[%c0_3, %c0_4] : memref<32x96xf32, #tpu.memory_space<vmem>>, vector<32x96xf32>
    %cst = arith.constant dense<0.000000e+00> : vector<8x96xf32>
    %4 = tpu.matmul %0, %3, %cst {dimension_numbers = #tpu.dot_dimension_numbers<[1], [0], [0], [1], [0, 0, 1, 1], [], []>} : vector<8x32xf32>, vector<32x96xf32>, vector<8x96xf32> -> vector<8x96xf32>
    %c0_5 = arith.constant 0 : index
    %c0_6 = arith.constant 0 : index
    %5 = vector.load %arg4[%c0_5, %c0_6] : memref<1x96xf32, #tpu.memory_space<vmem>>, vector<1x96xf32>
    %6 = vector.broadcast %5 : vector<1x96xf32> to vector<8x96xf32>
    %7 = arith.addf %4, %6 : vector<8x96xf32>
    %8 = vector.extract_strided_slice %7 {offsets = [0, 0], sizes = [8, 32], strides = [1, 1]} : vector<8x96xf32> to vector<8x32xf32>
    %9 = vector.extract_strided_slice %7 {offsets = [0, 32], sizes = [8, 32], strides = [1, 1]} : vector<8x96xf32> to vector<8x32xf32>
    %10 = vector.extract_strided_slice %7 {offsets = [0, 64], sizes = [8, 32], strides = [1, 1]} : vector<8x96xf32> to vector<8x32xf32>
    %cst_7 = arith.constant 0.000000e+00 : f32
    %11 = vector.broadcast %cst_7 : f32 to vector<8x32xf32>
    %c0_i32 = arith.constant 0 : i32
    %12 = vector.broadcast %c0_i32 : i32 to vector<1x32xi32>
    %13 = arith.cmpi sge, %2, %12 : vector<1x32xi32>
    %c8_i32 = arith.constant 8 : i32
    %14 = vector.broadcast %c8_i32 : i32 to vector<1x32xi32>
    %15 = arith.cmpi slt, %2, %14 : vector<1x32xi32>
    %16 = arith.andi %13, %15 : vector<1x32xi1>
    %17 = arith.extui %16 : vector<1x32xi1> to vector<1x32xi32>
    %18 = arith.sitofp %17 : vector<1x32xi32> to vector<1x32xf32>
    %19 = vector.broadcast %18 : vector<1x32xf32> to vector<8x32xf32>
    %20 = arith.mulf %8, %19 : vector<8x32xf32>
    %cst_8 = arith.constant dense<0.000000e+00> : vector<8x8xf32>
    %21 = tpu.matmul %20, %9, %cst_8 {dimension_numbers = #tpu.dot_dimension_numbers<[1], [1], [0], [0], [0, 0, 1, 0], [], []>} : vector<8x32xf32>, vector<8x32xf32>, vector<8x8xf32> -> vector<8x8xf32>
    %cst_9 = arith.constant 0.353553385 : f32
    %22 = vector.broadcast %cst_9 : f32 to vector<8x8xf32>
    %23 = arith.mulf %21, %22 : vector<8x8xf32>
    %cst_10 = arith.constant dense<0xFF800000> : vector<8xf32>
    %24 = vector.multi_reduction <maximumf>, %23, %cst_10 [1] : vector<8x8xf32> to vector<8xf32>
    %25 = vector.shape_cast %24 : vector<8xf32> to vector<8x1xf32>
    %26 = vector.broadcast %25 : vector<8x1xf32> to vector<8x8xf32>
    %27 = arith.subf %23, %26 : vector<8x8xf32>
    %28 = math.exp %27 : vector<8x8xf32>
    %cst_11 = arith.constant dense<0.000000e+00> : vector<8xf32>
    %29 = vector.multi_reduction <add>, %28, %cst_11 [1] : vector<8x8xf32> to vector<8xf32>
    %30 = vector.shape_cast %29 : vector<8xf32> to vector<8x1xf32>
    %31 = tpu.reciprocal %30 {approx = true} : vector<8x1xf32> -> vector<8x1xf32>
    %32 = vector.broadcast %31 : vector<8x1xf32> to vector<8x8xf32>
    %33 = arith.mulf %28, %32 : vector<8x8xf32>
    %34 = vector.broadcast %18 : vector<1x32xf32> to vector<8x32xf32>
    %35 = arith.mulf %10, %34 : vector<8x32xf32>
    %cst_12 = arith.constant dense<0.000000e+00> : vector<8x32xf32>
    %36 = tpu.matmul %33, %35, %cst_12 {dimension_numbers = #tpu.dot_dimension_numbers<[1], [0], [0], [1], [0, 0, 1, 1], [], []>} : vector<8x8xf32>, vector<8x32xf32>, vector<8x32xf32> -> vector<8x32xf32>
    %37 = arith.addf %11, %36 : vector<8x32xf32>
    %c8_i32_13 = arith.constant 8 : i32
    %38 = vector.broadcast %c8_i32_13 : i32 to vector<1x32xi32>
    %39 = arith.cmpi sge, %2, %38 : vector<1x32xi32>
    %c16_i32 = arith.constant 16 : i32
    %40 = vector.broadcast %c16_i32 : i32 to vector<1x32xi32>
    %41 = arith.cmpi slt, %2, %40 : vector<1x32xi32>
    %42 = arith.andi %39, %41 : vector<1x32xi1>
    %43 = arith.extui %42 : vector<1x32xi1> to vector<1x32xi32>
    %44 = arith.sitofp %43 : vector<1x32xi32> to vector<1x32xf32>
    %45 = vector.broadcast %44 : vector<1x32xf32> to vector<8x32xf32>
    %46 = arith.mulf %8, %45 : vector<8x32xf32>
    %cst_14 = arith.constant dense<0.000000e+00> : vector<8x8xf32>
    %47 = tpu.matmul %46, %9, %cst_14 {dimension_numbers = #tpu.dot_dimension_numbers<[1], [1], [0], [0], [0, 0, 1, 0], [], []>} : vector<8x32xf32>, vector<8x32xf32>, vector<8x8xf32> -> vector<8x8xf32>
    %cst_15 = arith.constant 0.353553385 : f32
    %48 = vector.broadcast %cst_15 : f32 to vector<8x8xf32>
    %49 = arith.mulf %47, %48 : vector<8x8xf32>
    %cst_16 = arith.constant dense<0xFF800000> : vector<8xf32>
    %50 = vector.multi_reduction <maximumf>, %49, %cst_16 [1] : vector<8x8xf32> to vector<8xf32>
    %51 = vector.shape_cast %50 : vector<8xf32> to vector<8x1xf32>
    %52 = vector.broadcast %51 : vector<8x1xf32> to vector<8x8xf32>
    %53 = arith.subf %49, %52 : vector<8x8xf32>
    %54 = math.exp %53 : vector<8x8xf32>
    %cst_17 = arith.constant dense<0.000000e+00> : vector<8xf32>
    %55 = vector.multi_reduction <add>, %54, %cst_17 [1] : vector<8x8xf32> to vector<8xf32>
    %56 = vector.shape_cast %55 : vector<8xf32> to vector<8x1xf32>
    %57 = tpu.reciprocal %56 {approx = true} : vector<8x1xf32> -> vector<8x1xf32>
    %58 = vector.broadcast %57 : vector<8x1xf32> to vector<8x8xf32>
    %59 = arith.mulf %54, %58 : vector<8x8xf32>
    %60 = vector.broadcast %44 : vector<1x32xf32> to vector<8x32xf32>
    %61 = arith.mulf %10, %60 : vector<8x32xf32>
    %cst_18 = arith.constant dense<0.000000e+00> : vector<8x32xf32>
    %62 = tpu.matmul %59, %61, %cst_18 {dimension_numbers = #tpu.dot_dimension_numbers<[1], [0], [0], [1], [0, 0, 1, 1], [], []>} : vector<8x8xf32>, vector<8x32xf32>, vector<8x32xf32> -> vector<8x32xf32>
    %63 = arith.addf %37, %62 : vector<8x32xf32>
    %c16_i32_19 = arith.constant 16 : i32
    %64 = vector.broadcast %c16_i32_19 : i32 to vector<1x32xi32>
    %65 = arith.cmpi sge, %2, %64 : vector<1x32xi32>
    %c24_i32 = arith.constant 24 : i32
    %66 = vector.broadcast %c24_i32 : i32 to vector<1x32xi32>
    %67 = arith.cmpi slt, %2, %66 : vector<1x32xi32>
    %68 = arith.andi %65, %67 : vector<1x32xi1>
    %69 = arith.extui %68 : vector<1x32xi1> to vector<1x32xi32>
    %70 = arith.sitofp %69 : vector<1x32xi32> to vector<1x32xf32>
    %71 = vector.broadcast %70 : vector<1x32xf32> to vector<8x32xf32>
    %72 = arith.mulf %8, %71 : vector<8x32xf32>
    %cst_20 = arith.constant dense<0.000000e+00> : vector<8x8xf32>
    %73 = tpu.matmul %72, %9, %cst_20 {dimension_numbers = #tpu.dot_dimension_numbers<[1], [1], [0], [0], [0, 0, 1, 0], [], []>} : vector<8x32xf32>, vector<8x32xf32>, vector<8x8xf32> -> vector<8x8xf32>
    %cst_21 = arith.constant 0.353553385 : f32
    %74 = vector.broadcast %cst_21 : f32 to vector<8x8xf32>
    %75 = arith.mulf %73, %74 : vector<8x8xf32>
    %cst_22 = arith.constant dense<0xFF800000> : vector<8xf32>
    %76 = vector.multi_reduction <maximumf>, %75, %cst_22 [1] : vector<8x8xf32> to vector<8xf32>
    %77 = vector.shape_cast %76 : vector<8xf32> to vector<8x1xf32>
    %78 = vector.broadcast %77 : vector<8x1xf32> to vector<8x8xf32>
    %79 = arith.subf %75, %78 : vector<8x8xf32>
    %80 = math.exp %79 : vector<8x8xf32>
    %cst_23 = arith.constant dense<0.000000e+00> : vector<8xf32>
    %81 = vector.multi_reduction <add>, %80, %cst_23 [1] : vector<8x8xf32> to vector<8xf32>
    %82 = vector.shape_cast %81 : vector<8xf32> to vector<8x1xf32>
    %83 = tpu.reciprocal %82 {approx = true} : vector<8x1xf32> -> vector<8x1xf32>
    %84 = vector.broadcast %83 : vector<8x1xf32> to vector<8x8xf32>
    %85 = arith.mulf %80, %84 : vector<8x8xf32>
    %86 = vector.broadcast %70 : vector<1x32xf32> to vector<8x32xf32>
    %87 = arith.mulf %10, %86 : vector<8x32xf32>
    %cst_24 = arith.constant dense<0.000000e+00> : vector<8x32xf32>
    %88 = tpu.matmul %85, %87, %cst_24 {dimension_numbers = #tpu.dot_dimension_numbers<[1], [0], [0], [1], [0, 0, 1, 1], [], []>} : vector<8x8xf32>, vector<8x32xf32>, vector<8x32xf32> -> vector<8x32xf32>
    %89 = arith.addf %63, %88 : vector<8x32xf32>
    %c24_i32_25 = arith.constant 24 : i32
    %90 = vector.broadcast %c24_i32_25 : i32 to vector<1x32xi32>
    %91 = arith.cmpi sge, %2, %90 : vector<1x32xi32>
    %c32_i32 = arith.constant 32 : i32
    %92 = vector.broadcast %c32_i32 : i32 to vector<1x32xi32>
    %93 = arith.cmpi slt, %2, %92 : vector<1x32xi32>
    %94 = arith.andi %91, %93 : vector<1x32xi1>
    %95 = arith.extui %94 : vector<1x32xi1> to vector<1x32xi32>
    %96 = arith.sitofp %95 : vector<1x32xi32> to vector<1x32xf32>
    %97 = vector.broadcast %96 : vector<1x32xf32> to vector<8x32xf32>
    %98 = arith.mulf %8, %97 : vector<8x32xf32>
    %cst_26 = arith.constant dense<0.000000e+00> : vector<8x8xf32>
    %99 = tpu.matmul %98, %9, %cst_26 {dimension_numbers = #tpu.dot_dimension_numbers<[1], [1], [0], [0], [0, 0, 1, 0], [], []>} : vector<8x32xf32>, vector<8x32xf32>, vector<8x8xf32> -> vector<8x8xf32>
    %cst_27 = arith.constant 0.353553385 : f32
    %100 = vector.broadcast %cst_27 : f32 to vector<8x8xf32>
    %101 = arith.mulf %99, %100 : vector<8x8xf32>
    %cst_28 = arith.constant dense<0xFF800000> : vector<8xf32>
    %102 = vector.multi_reduction <maximumf>, %101, %cst_28 [1] : vector<8x8xf32> to vector<8xf32>
    %103 = vector.shape_cast %102 : vector<8xf32> to vector<8x1xf32>
    %104 = vector.broadcast %103 : vector<8x1xf32> to vector<8x8xf32>
    %105 = arith.subf %101, %104 : vector<8x8xf32>
    %106 = math.exp %105 : vector<8x8xf32>
    %cst_29 = arith.constant dense<0.000000e+00> : vector<8xf32>
    %107 = vector.multi_reduction <add>, %106, %cst_29 [1] : vector<8x8xf32> to vector<8xf32>
    %108 = vector.shape_cast %107 : vector<8xf32> to vector<8x1xf32>
    %109 = tpu.reciprocal %108 {approx = true} : vector<8x1xf32> -> vector<8x1xf32>
    %110 = vector.broadcast %109 : vector<8x1xf32> to vector<8x8xf32>
    %111 = arith.mulf %106, %110 : vector<8x8xf32>
    %112 = vector.broadcast %96 : vector<1x32xf32> to vector<8x32xf32>
    %113 = arith.mulf %10, %112 : vector<8x32xf32>
    %cst_30 = arith.constant dense<0.000000e+00> : vector<8x32xf32>
    %114 = tpu.matmul %111, %113, %cst_30 {dimension_numbers = #tpu.dot_dimension_numbers<[1], [0], [0], [1], [0, 0, 1, 1], [], []>} : vector<8x8xf32>, vector<8x32xf32>, vector<8x32xf32> -> vector<8x32xf32>
    %115 = arith.addf %89, %114 : vector<8x32xf32>
    %c0_31 = arith.constant 0 : index
    %c0_32 = arith.constant 0 : index
    %116 = vector.load %arg5[%c0_31, %c0_32] : memref<32x32xf32, #tpu.memory_space<vmem>>, vector<32x32xf32>
    %cst_33 = arith.constant dense<0.000000e+00> : vector<8x32xf32>
    %117 = tpu.matmul %115, %116, %cst_33 {dimension_numbers = #tpu.dot_dimension_numbers<[1], [0], [0], [1], [0, 0, 1, 1], [], []>} : vector<8x32xf32>, vector<32x32xf32>, vector<8x32xf32> -> vector<8x32xf32>
    %c0_34 = arith.constant 0 : index
    %c0_35 = arith.constant 0 : index
    %118 = vector.load %arg6[%c0_34, %c0_35] : memref<1x32xf32, #tpu.memory_space<vmem>>, vector<1x32xf32>
    %119 = vector.broadcast %118 : vector<1x32xf32> to vector<8x32xf32>
    %120 = arith.addf %117, %119 : vector<8x32xf32>
    %121 = arith.addf %0, %120 : vector<8x32xf32>
    %c0_36 = arith.constant 0 : index
    %c0_37 = arith.constant 0 : index
    %122 = vector.load %arg7[%c0_36, %c0_37] : memref<1x32xf32, #tpu.memory_space<vmem>>, vector<1x32xf32>
    %c0_38 = arith.constant 0 : index
    %c0_39 = arith.constant 0 : index
    %123 = vector.load %arg8[%c0_38, %c0_39] : memref<1x32xf32, #tpu.memory_space<vmem>>, vector<1x32xf32>
    %cst_40 = arith.constant dense<0.000000e+00> : vector<8xf32>
    %124 = vector.multi_reduction <add>, %121, %cst_40 [1] : vector<8x32xf32> to vector<8xf32>
    %125 = vector.shape_cast %124 : vector<8xf32> to vector<8x1xf32>
    %cst_41 = arith.constant 3.200000e+01 : f32
    %126 = vector.broadcast %cst_41 : f32 to vector<8x1xf32>
    %127 = arith.divf %125, %126 : vector<8x1xf32>
    %128 = vector.broadcast %127 : vector<8x1xf32> to vector<8x32xf32>
    %129 = arith.subf %121, %128 : vector<8x32xf32>
    %130 = arith.mulf %129, %129 : vector<8x32xf32>
    %cst_42 = arith.constant dense<0.000000e+00> : vector<8xf32>
    %131 = vector.multi_reduction <add>, %130, %cst_42 [1] : vector<8x32xf32> to vector<8xf32>
    %132 = vector.shape_cast %131 : vector<8xf32> to vector<8x1xf32>
    %cst_43 = arith.constant 3.200000e+01 : f32
    %133 = vector.broadcast %cst_43 : f32 to vector<8x1xf32>
    %134 = arith.divf %132, %133 : vector<8x1xf32>
    %135 = vector.broadcast %127 : vector<8x1xf32> to vector<8x32xf32>
    %136 = arith.subf %121, %135 : vector<8x32xf32>
    %cst_44 = arith.constant 9.99999974E-6 : f32
    %137 = vector.broadcast %cst_44 : f32 to vector<8x1xf32>
    %138 = arith.addf %134, %137 : vector<8x1xf32>
    %139 = math.rsqrt %138 : vector<8x1xf32>
    %140 = vector.broadcast %139 : vector<8x1xf32> to vector<8x32xf32>
    %141 = arith.mulf %136, %140 : vector<8x32xf32>
    %142 = vector.broadcast %122 : vector<1x32xf32> to vector<8x32xf32>
    %143 = arith.mulf %141, %142 : vector<8x32xf32>
    %144 = vector.broadcast %123 : vector<1x32xf32> to vector<8x32xf32>
    %145 = arith.addf %143, %144 : vector<8x32xf32>
    %c0_45 = arith.constant 0 : index
    %c0_46 = arith.constant 0 : index
    %146 = vector.load %arg9[%c0_45, %c0_46] : memref<32x32xf32, #tpu.memory_space<vmem>>, vector<32x32xf32>
    %cst_47 = arith.constant dense<0.000000e+00> : vector<8x32xf32>
    %147 = tpu.matmul %145, %146, %cst_47 {dimension_numbers = #tpu.dot_dimension_numbers<[1], [0], [0], [1], [0, 0, 1, 1], [], []>} : vector<8x32xf32>, vector<32x32xf32>, vector<8x32xf32> -> vector<8x32xf32>
    %c0_48 = arith.constant 0 : index
    %c0_49 = arith.constant 0 : index
    %148 = vector.load %arg10[%c0_48, %c0_49] : memref<1x32xf32, #tpu.memory_space<vmem>>, vector<1x32xf32>
    %149 = vector.broadcast %148 : vector<1x32xf32> to vector<8x32xf32>
    %150 = arith.addf %147, %149 : vector<8x32xf32>
    %c0_50 = arith.constant 0 : index
    %c0_51 = arith.constant 0 : index
    %151 = vector.load %arg11[%c0_50, %c0_51] : memref<32x64xf32, #tpu.memory_space<vmem>>, vector<32x64xf32>
    %cst_52 = arith.constant dense<0.000000e+00> : vector<8x64xf32>
    %152 = tpu.matmul %1, %151, %cst_52 {dimension_numbers = #tpu.dot_dimension_numbers<[1], [0], [0], [1], [0, 0, 1, 1], [], []>} : vector<8x32xf32>, vector<32x64xf32>, vector<8x64xf32> -> vector<8x64xf32>
    %c0_53 = arith.constant 0 : index
    %c0_54 = arith.constant 0 : index
    %153 = vector.load %arg12[%c0_53, %c0_54] : memref<1x64xf32, #tpu.memory_space<vmem>>, vector<1x64xf32>
    %154 = vector.broadcast %153 : vector<1x64xf32> to vector<8x64xf32>
    %155 = arith.addf %152, %154 : vector<8x64xf32>
    %156 = vector.extract_strided_slice %155 {offsets = [0, 0], sizes = [8, 32], strides = [1, 1]} : vector<8x64xf32> to vector<8x32xf32>
    %157 = vector.extract_strided_slice %155 {offsets = [0, 32], sizes = [8, 32], strides = [1, 1]} : vector<8x64xf32> to vector<8x32xf32>
    %cst_55 = arith.constant 0.000000e+00 : f32
    %158 = vector.broadcast %cst_55 : f32 to vector<8x32xf32>
    %c0_i32_56 = arith.constant 0 : i32
    %159 = vector.broadcast %c0_i32_56 : i32 to vector<1x32xi32>
    %160 = arith.cmpi sge, %2, %159 : vector<1x32xi32>
    %c8_i32_57 = arith.constant 8 : i32
    %161 = vector.broadcast %c8_i32_57 : i32 to vector<1x32xi32>
    %162 = arith.cmpi slt, %2, %161 : vector<1x32xi32>
    %163 = arith.andi %160, %162 : vector<1x32xi1>
    %164 = arith.extui %163 : vector<1x32xi1> to vector<1x32xi32>
    %165 = arith.sitofp %164 : vector<1x32xi32> to vector<1x32xf32>
    %166 = vector.broadcast %165 : vector<1x32xf32> to vector<8x32xf32>
    %167 = arith.mulf %150, %166 : vector<8x32xf32>
    %cst_58 = arith.constant dense<0.000000e+00> : vector<8x8xf32>
    %168 = tpu.matmul %167, %156, %cst_58 {dimension_numbers = #tpu.dot_dimension_numbers<[1], [1], [0], [0], [0, 0, 1, 0], [], []>} : vector<8x32xf32>, vector<8x32xf32>, vector<8x8xf32> -> vector<8x8xf32>
    %cst_59 = arith.constant 0.353553385 : f32
    %169 = vector.broadcast %cst_59 : f32 to vector<8x8xf32>
    %170 = arith.mulf %168, %169 : vector<8x8xf32>
    %cst_60 = arith.constant dense<0xFF800000> : vector<8xf32>
    %171 = vector.multi_reduction <maximumf>, %170, %cst_60 [1] : vector<8x8xf32> to vector<8xf32>
    %172 = vector.shape_cast %171 : vector<8xf32> to vector<8x1xf32>
    %173 = vector.broadcast %172 : vector<8x1xf32> to vector<8x8xf32>
    %174 = arith.subf %170, %173 : vector<8x8xf32>
    %175 = math.exp %174 : vector<8x8xf32>
    %cst_61 = arith.constant dense<0.000000e+00> : vector<8xf32>
    %176 = vector.multi_reduction <add>, %175, %cst_61 [1] : vector<8x8xf32> to vector<8xf32>
    %177 = vector.shape_cast %176 : vector<8xf32> to vector<8x1xf32>
    %178 = tpu.reciprocal %177 {approx = true} : vector<8x1xf32> -> vector<8x1xf32>
    %179 = vector.broadcast %178 : vector<8x1xf32> to vector<8x8xf32>
    %180 = arith.mulf %175, %179 : vector<8x8xf32>
    %181 = vector.broadcast %165 : vector<1x32xf32> to vector<8x32xf32>
    %182 = arith.mulf %157, %181 : vector<8x32xf32>
    %cst_62 = arith.constant dense<0.000000e+00> : vector<8x32xf32>
    %183 = tpu.matmul %180, %182, %cst_62 {dimension_numbers = #tpu.dot_dimension_numbers<[1], [0], [0], [1], [0, 0, 1, 1], [], []>} : vector<8x8xf32>, vector<8x32xf32>, vector<8x32xf32> -> vector<8x32xf32>
    %184 = arith.addf %158, %183 : vector<8x32xf32>
    %c8_i32_63 = arith.constant 8 : i32
    %185 = vector.broadcast %c8_i32_63 : i32 to vector<1x32xi32>
    %186 = arith.cmpi sge, %2, %185 : vector<1x32xi32>
    %c16_i32_64 = arith.constant 16 : i32
    %187 = vector.broadcast %c16_i32_64 : i32 to vector<1x32xi32>
    %188 = arith.cmpi slt, %2, %187 : vector<1x32xi32>
    %189 = arith.andi %186, %188 : vector<1x32xi1>
    %190 = arith.extui %189 : vector<1x32xi1> to vector<1x32xi32>
    %191 = arith.sitofp %190 : vector<1x32xi32> to vector<1x32xf32>
    %192 = vector.broadcast %191 : vector<1x32xf32> to vector<8x32xf32>
    %193 = arith.mulf %150, %192 : vector<8x32xf32>
    %cst_65 = arith.constant dense<0.000000e+00> : vector<8x8xf32>
    %194 = tpu.matmul %193, %156, %cst_65 {dimension_numbers = #tpu.dot_dimension_numbers<[1], [1], [0], [0], [0, 0, 1, 0], [], []>} : vector<8x32xf32>, vector<8x32xf32>, vector<8x8xf32> -> vector<8x8xf32>
    %cst_66 = arith.constant 0.353553385 : f32
    %195 = vector.broadcast %cst_66 : f32 to vector<8x8xf32>
    %196 = arith.mulf %194, %195 : vector<8x8xf32>
    %cst_67 = arith.constant dense<0xFF800000> : vector<8xf32>
    %197 = vector.multi_reduction <maximumf>, %196, %cst_67 [1] : vector<8x8xf32> to vector<8xf32>
    %198 = vector.shape_cast %197 : vector<8xf32> to vector<8x1xf32>
    %199 = vector.broadcast %198 : vector<8x1xf32> to vector<8x8xf32>
    %200 = arith.subf %196, %199 : vector<8x8xf32>
    %201 = math.exp %200 : vector<8x8xf32>
    %cst_68 = arith.constant dense<0.000000e+00> : vector<8xf32>
    %202 = vector.multi_reduction <add>, %201, %cst_68 [1] : vector<8x8xf32> to vector<8xf32>
    %203 = vector.shape_cast %202 : vector<8xf32> to vector<8x1xf32>
    %204 = tpu.reciprocal %203 {approx = true} : vector<8x1xf32> -> vector<8x1xf32>
    %205 = vector.broadcast %204 : vector<8x1xf32> to vector<8x8xf32>
    %206 = arith.mulf %201, %205 : vector<8x8xf32>
    %207 = vector.broadcast %191 : vector<1x32xf32> to vector<8x32xf32>
    %208 = arith.mulf %157, %207 : vector<8x32xf32>
    %cst_69 = arith.constant dense<0.000000e+00> : vector<8x32xf32>
    %209 = tpu.matmul %206, %208, %cst_69 {dimension_numbers = #tpu.dot_dimension_numbers<[1], [0], [0], [1], [0, 0, 1, 1], [], []>} : vector<8x8xf32>, vector<8x32xf32>, vector<8x32xf32> -> vector<8x32xf32>
    %210 = arith.addf %184, %209 : vector<8x32xf32>
    %c16_i32_70 = arith.constant 16 : i32
    %211 = vector.broadcast %c16_i32_70 : i32 to vector<1x32xi32>
    %212 = arith.cmpi sge, %2, %211 : vector<1x32xi32>
    %c24_i32_71 = arith.constant 24 : i32
    %213 = vector.broadcast %c24_i32_71 : i32 to vector<1x32xi32>
    %214 = arith.cmpi slt, %2, %213 : vector<1x32xi32>
    %215 = arith.andi %212, %214 : vector<1x32xi1>
    %216 = arith.extui %215 : vector<1x32xi1> to vector<1x32xi32>
    %217 = arith.sitofp %216 : vector<1x32xi32> to vector<1x32xf32>
    %218 = vector.broadcast %217 : vector<1x32xf32> to vector<8x32xf32>
    %219 = arith.mulf %150, %218 : vector<8x32xf32>
    %cst_72 = arith.constant dense<0.000000e+00> : vector<8x8xf32>
    %220 = tpu.matmul %219, %156, %cst_72 {dimension_numbers = #tpu.dot_dimension_numbers<[1], [1], [0], [0], [0, 0, 1, 0], [], []>} : vector<8x32xf32>, vector<8x32xf32>, vector<8x8xf32> -> vector<8x8xf32>
    %cst_73 = arith.constant 0.353553385 : f32
    %221 = vector.broadcast %cst_73 : f32 to vector<8x8xf32>
    %222 = arith.mulf %220, %221 : vector<8x8xf32>
    %cst_74 = arith.constant dense<0xFF800000> : vector<8xf32>
    %223 = vector.multi_reduction <maximumf>, %222, %cst_74 [1] : vector<8x8xf32> to vector<8xf32>
    %224 = vector.shape_cast %223 : vector<8xf32> to vector<8x1xf32>
    %225 = vector.broadcast %224 : vector<8x1xf32> to vector<8x8xf32>
    %226 = arith.subf %222, %225 : vector<8x8xf32>
    %227 = math.exp %226 : vector<8x8xf32>
    %cst_75 = arith.constant dense<0.000000e+00> : vector<8xf32>
    %228 = vector.multi_reduction <add>, %227, %cst_75 [1] : vector<8x8xf32> to vector<8xf32>
    %229 = vector.shape_cast %228 : vector<8xf32> to vector<8x1xf32>
    %230 = tpu.reciprocal %229 {approx = true} : vector<8x1xf32> -> vector<8x1xf32>
    %231 = vector.broadcast %230 : vector<8x1xf32> to vector<8x8xf32>
    %232 = arith.mulf %227, %231 : vector<8x8xf32>
    %233 = vector.broadcast %217 : vector<1x32xf32> to vector<8x32xf32>
    %234 = arith.mulf %157, %233 : vector<8x32xf32>
    %cst_76 = arith.constant dense<0.000000e+00> : vector<8x32xf32>
    %235 = tpu.matmul %232, %234, %cst_76 {dimension_numbers = #tpu.dot_dimension_numbers<[1], [0], [0], [1], [0, 0, 1, 1], [], []>} : vector<8x8xf32>, vector<8x32xf32>, vector<8x32xf32> -> vector<8x32xf32>
    %236 = arith.addf %210, %235 : vector<8x32xf32>
    %c24_i32_77 = arith.constant 24 : i32
    %237 = vector.broadcast %c24_i32_77 : i32 to vector<1x32xi32>
    %238 = arith.cmpi sge, %2, %237 : vector<1x32xi32>
    %c32_i32_78 = arith.constant 32 : i32
    %239 = vector.broadcast %c32_i32_78 : i32 to vector<1x32xi32>
    %240 = arith.cmpi slt, %2, %239 : vector<1x32xi32>
    %241 = arith.andi %238, %240 : vector<1x32xi1>
    %242 = arith.extui %241 : vector<1x32xi1> to vector<1x32xi32>
    %243 = arith.sitofp %242 : vector<1x32xi32> to vector<1x32xf32>
    %244 = vector.broadcast %243 : vector<1x32xf32> to vector<8x32xf32>
    %245 = arith.mulf %150, %244 : vector<8x32xf32>
    %cst_79 = arith.constant dense<0.000000e+00> : vector<8x8xf32>
    %246 = tpu.matmul %245, %156, %cst_79 {dimension_numbers = #tpu.dot_dimension_numbers<[1], [1], [0], [0], [0, 0, 1, 0], [], []>} : vector<8x32xf32>, vector<8x32xf32>, vector<8x8xf32> -> vector<8x8xf32>
    %cst_80 = arith.constant 0.353553385 : f32
    %247 = vector.broadcast %cst_80 : f32 to vector<8x8xf32>
    %248 = arith.mulf %246, %247 : vector<8x8xf32>
    %cst_81 = arith.constant dense<0xFF800000> : vector<8xf32>
    %249 = vector.multi_reduction <maximumf>, %248, %cst_81 [1] : vector<8x8xf32> to vector<8xf32>
    %250 = vector.shape_cast %249 : vector<8xf32> to vector<8x1xf32>
    %251 = vector.broadcast %250 : vector<8x1xf32> to vector<8x8xf32>
    %252 = arith.subf %248, %251 : vector<8x8xf32>
    %253 = math.exp %252 : vector<8x8xf32>
    %cst_82 = arith.constant dense<0.000000e+00> : vector<8xf32>
    %254 = vector.multi_reduction <add>, %253, %cst_82 [1] : vector<8x8xf32> to vector<8xf32>
    %255 = vector.shape_cast %254 : vector<8xf32> to vector<8x1xf32>
    %256 = tpu.reciprocal %255 {approx = true} : vector<8x1xf32> -> vector<8x1xf32>
    %257 = vector.broadcast %256 : vector<8x1xf32> to vector<8x8xf32>
    %258 = arith.mulf %253, %257 : vector<8x8xf32>
    %259 = vector.broadcast %243 : vector<1x32xf32> to vector<8x32xf32>
    %260 = arith.mulf %157, %259 : vector<8x32xf32>
    %cst_83 = arith.constant dense<0.000000e+00> : vector<8x32xf32>
    %261 = tpu.matmul %258, %260, %cst_83 {dimension_numbers = #tpu.dot_dimension_numbers<[1], [0], [0], [1], [0, 0, 1, 1], [], []>} : vector<8x8xf32>, vector<8x32xf32>, vector<8x32xf32> -> vector<8x32xf32>
    %262 = arith.addf %236, %261 : vector<8x32xf32>
    %c0_84 = arith.constant 0 : index
    %c0_85 = arith.constant 0 : index
    %263 = vector.load %arg13[%c0_84, %c0_85] : memref<32x32xf32, #tpu.memory_space<vmem>>, vector<32x32xf32>
    %cst_86 = arith.constant dense<0.000000e+00> : vector<8x32xf32>
    %264 = tpu.matmul %262, %263, %cst_86 {dimension_numbers = #tpu.dot_dimension_numbers<[1], [0], [0], [1], [0, 0, 1, 1], [], []>} : vector<8x32xf32>, vector<32x32xf32>, vector<8x32xf32> -> vector<8x32xf32>
    %c0_87 = arith.constant 0 : index
    %c0_88 = arith.constant 0 : index
    %265 = vector.load %arg14[%c0_87, %c0_88] : memref<1x32xf32, #tpu.memory_space<vmem>>, vector<1x32xf32>
    %266 = vector.broadcast %265 : vector<1x32xf32> to vector<8x32xf32>
    %267 = arith.addf %264, %266 : vector<8x32xf32>
    %268 = arith.addf %145, %267 : vector<8x32xf32>
    %c0_89 = arith.constant 0 : index
    %c0_90 = arith.constant 0 : index
    %269 = vector.load %arg15[%c0_89, %c0_90] : memref<1x32xf32, #tpu.memory_space<vmem>>, vector<1x32xf32>
    %c0_91 = arith.constant 0 : index
    %c0_92 = arith.constant 0 : index
    %270 = vector.load %arg16[%c0_91, %c0_92] : memref<1x32xf32, #tpu.memory_space<vmem>>, vector<1x32xf32>
    %cst_93 = arith.constant dense<0.000000e+00> : vector<8xf32>
    %271 = vector.multi_reduction <add>, %268, %cst_93 [1] : vector<8x32xf32> to vector<8xf32>
    %272 = vector.shape_cast %271 : vector<8xf32> to vector<8x1xf32>
    %cst_94 = arith.constant 3.200000e+01 : f32
    %273 = vector.broadcast %cst_94 : f32 to vector<8x1xf32>
    %274 = arith.divf %272, %273 : vector<8x1xf32>
    %275 = vector.broadcast %274 : vector<8x1xf32> to vector<8x32xf32>
    %276 = arith.subf %268, %275 : vector<8x32xf32>
    %277 = arith.mulf %276, %276 : vector<8x32xf32>
    %cst_95 = arith.constant dense<0.000000e+00> : vector<8xf32>
    %278 = vector.multi_reduction <add>, %277, %cst_95 [1] : vector<8x32xf32> to vector<8xf32>
    %279 = vector.shape_cast %278 : vector<8xf32> to vector<8x1xf32>
    %cst_96 = arith.constant 3.200000e+01 : f32
    %280 = vector.broadcast %cst_96 : f32 to vector<8x1xf32>
    %281 = arith.divf %279, %280 : vector<8x1xf32>
    %282 = vector.broadcast %274 : vector<8x1xf32> to vector<8x32xf32>
    %283 = arith.subf %268, %282 : vector<8x32xf32>
    %cst_97 = arith.constant 9.99999974E-6 : f32
    %284 = vector.broadcast %cst_97 : f32 to vector<8x1xf32>
    %285 = arith.addf %281, %284 : vector<8x1xf32>
    %286 = math.rsqrt %285 : vector<8x1xf32>
    %287 = vector.broadcast %286 : vector<8x1xf32> to vector<8x32xf32>
    %288 = arith.mulf %283, %287 : vector<8x32xf32>
    %289 = vector.broadcast %269 : vector<1x32xf32> to vector<8x32xf32>
    %290 = arith.mulf %288, %289 : vector<8x32xf32>
    %291 = vector.broadcast %270 : vector<1x32xf32> to vector<8x32xf32>
    %292 = arith.addf %290, %291 : vector<8x32xf32>
    %c0_98 = arith.constant 0 : index
    %c0_99 = arith.constant 0 : index
    %293 = vector.load %arg17[%c0_98, %c0_99] : memref<32x64xf32, #tpu.memory_space<vmem>>, vector<32x64xf32>
    %cst_100 = arith.constant dense<0.000000e+00> : vector<8x64xf32>
    %294 = tpu.matmul %292, %293, %cst_100 {dimension_numbers = #tpu.dot_dimension_numbers<[1], [0], [0], [1], [0, 0, 1, 1], [], []>} : vector<8x32xf32>, vector<32x64xf32>, vector<8x64xf32> -> vector<8x64xf32>
    %c0_101 = arith.constant 0 : index
    %c0_102 = arith.constant 0 : index
    %295 = vector.load %arg18[%c0_101, %c0_102] : memref<1x64xf32, #tpu.memory_space<vmem>>, vector<1x64xf32>
    %296 = vector.broadcast %295 : vector<1x64xf32> to vector<8x64xf32>
    %297 = arith.addf %294, %296 : vector<8x64xf32>
    %cst_103 = arith.constant 0.000000e+00 : f32
    %298 = vector.broadcast %cst_103 : f32 to vector<8x64xf32>
    %299 = arith.maximumf %297, %298 : vector<8x64xf32>
    %c0_104 = arith.constant 0 : index
    %c0_105 = arith.constant 0 : index
    %300 = vector.load %arg19[%c0_104, %c0_105] : memref<64x32xf32, #tpu.memory_space<vmem>>, vector<64x32xf32>
    %cst_106 = arith.constant dense<0.000000e+00> : vector<8x32xf32>
    %301 = tpu.matmul %299, %300, %cst_106 {dimension_numbers = #tpu.dot_dimension_numbers<[1], [0], [0], [1], [0, 0, 1, 1], [], []>} : vector<8x64xf32>, vector<64x32xf32>, vector<8x32xf32> -> vector<8x32xf32>
    %c0_107 = arith.constant 0 : index
    %c0_108 = arith.constant 0 : index
    %302 = vector.load %arg20[%c0_107, %c0_108] : memref<1x32xf32, #tpu.memory_space<vmem>>, vector<1x32xf32>
    %303 = vector.broadcast %302 : vector<1x32xf32> to vector<8x32xf32>
    %304 = arith.addf %301, %303 : vector<8x32xf32>
    %305 = arith.addf %292, %304 : vector<8x32xf32>
    %c0_109 = arith.constant 0 : index
    %c0_110 = arith.constant 0 : index
    %306 = vector.load %arg21[%c0_109, %c0_110] : memref<1x32xf32, #tpu.memory_space<vmem>>, vector<1x32xf32>
    %c0_111 = arith.constant 0 : index
    %c0_112 = arith.constant 0 : index
    %307 = vector.load %arg22[%c0_111, %c0_112] : memref<1x32xf32, #tpu.memory_space<vmem>>, vector<1x32xf32>
    %cst_113 = arith.constant dense<0.000000e+00> : vector<8xf32>
    %308 = vector.multi_reduction <add>, %305, %cst_113 [1] : vector<8x32xf32> to vector<8xf32>
    %309 = vector.shape_cast %308 : vector<8xf32> to vector<8x1xf32>
    %cst_114 = arith.constant 3.200000e+01 : f32
    %310 = vector.broadcast %cst_114 : f32 to vector<8x1xf32>
    %311 = arith.divf %309, %310 : vector<8x1xf32>
    %312 = vector.broadcast %311 : vector<8x1xf32> to vector<8x32xf32>
    %313 = arith.subf %305, %312 : vector<8x32xf32>
    %314 = arith.mulf %313, %313 : vector<8x32xf32>
    %cst_115 = arith.constant dense<0.000000e+00> : vector<8xf32>
    %315 = vector.multi_reduction <add>, %314, %cst_115 [1] : vector<8x32xf32> to vector<8xf32>
    %316 = vector.shape_cast %315 : vector<8xf32> to vector<8x1xf32>
    %cst_116 = arith.constant 3.200000e+01 : f32
    %317 = vector.broadcast %cst_116 : f32 to vector<8x1xf32>
    %318 = arith.divf %316, %317 : vector<8x1xf32>
    %319 = vector.broadcast %311 : vector<8x1xf32> to vector<8x32xf32>
    %320 = arith.subf %305, %319 : vector<8x32xf32>
    %cst_117 = arith.constant 9.99999974E-6 : f32
    %321 = vector.broadcast %cst_117 : f32 to vector<8x1xf32>
    %322 = arith.addf %318, %321 : vector<8x1xf32>
    %323 = math.rsqrt %322 : vector<8x1xf32>
    %324 = vector.broadcast %323 : vector<8x1xf32> to vector<8x32xf32>
    %325 = arith.mulf %320, %324 : vector<8x32xf32>
    %326 = vector.broadcast %306 : vector<1x32xf32> to vector<8x32xf32>
    %327 = arith.mulf %325, %326 : vector<8x32xf32>
    %328 = vector.broadcast %307 : vector<1x32xf32> to vector<8x32xf32>
    %329 = arith.addf %327, %328 : vector<8x32xf32>
    %c0_118 = arith.constant 0 : index
    %c0_119 = arith.constant 0 : index
    %330 = vector.load %arg23[%c0_118, %c0_119] : memref<8x32xf32, #tpu.memory_space<vmem>>, vector<8x32xf32>
    tpu.vector_store %arg23[%c0_118, %c0_119], %329 {strides = array<i32>} : memref<8x32xf32, #tpu.memory_space<vmem>>, vector<8x32xf32>,
    return
  }
  func.func @transform_0(%arg0: i32) -> (i32, i32) {
    %c0_i32 = arith.constant 0 : i32
    %c0_i32_0 = arith.constant 0 : i32
    return %arg0, %c0_i32 : i32, i32
  }
  func.func @transform_1(%arg0: i32) -> (i32, i32) {
    %c0_i32 = arith.constant 0 : i32
    %c0_i32_0 = arith.constant 0 : i32
    return %arg0, %c0_i32 : i32, i32
  }
  func.func @transform_2(%arg0: i32) -> (i32, i32) {
    %c0_i32 = arith.constant 0 : i32
    %c0_i32_0 = arith.constant 0 : i32
    %c0_i32_1 = arith.constant 0 : i32
    return %c0_i32, %c0_i32_0 : i32, i32
  }
  func.func @transform_3(%arg0: i32) -> (i32, i32) {
    %c0_i32 = arith.constant 0 : i32
    %c0_i32_0 = arith.constant 0 : i32
    %c0_i32_1 = arith.constant 0 : i32
    return %c0_i32, %c0_i32_0 : i32, i32
  }
  func.func @transform_4(%arg0: i32) -> (i32, i32) {
    %c0_i32 = arith.constant 0 : i32
    %c0_i32_0 = arith.constant 0 : i32
    %c0_i32_1 = arith.constant 0 : i32
    return %c0_i32, %c0_i32_0 : i32, i32
  }
  func.func @transform_5(%arg0: i32) -> (i32, i32) {
    %c0_i32 = arith.constant 0 : i32
    %c0_i32_0 = arith.constant 0 : i32
    %c0_i32_1 = arith.constant 0 : i32
    return %c0_i32, %c0_i32_0 : i32, i32
  }
  func.func @transform_6(%arg0: i32) -> (i32, i32) {
    %c0_i32 = arith.constant 0 : i32
    %c0_i32_0 = arith.constant 0 : i32
    %c0_i32_1 = arith.constant 0 : i32
    return %c0_i32, %c0_i32_0 : i32, i32
  }
  func.func @transform_7(%arg0: i32) -> (i32, i32) {
    %c0_i32 = arith.constant 0 : i32
    %c0_i32_0 = arith.constant 0 : i32
    %c0_i32_1 = arith.constant 0 : i32
    return %c0_i32, %c0_i32_0 : i32, i32
  }
  func.func @transform_8(%arg0: i32) -> (i32, i32) {
    %c0_i32 = arith.constant 0 : i32
    %c0_i32_0 = arith.constant 0 : i32
    %c0_i32_1 = arith.constant 0 : i32
    return %c0_i32, %c0_i32_0 : i32, i32
  }
  func.func @transform_9(%arg0: i32) -> (i32, i32) {
    %c0_i32 = arith.constant 0 : i32
    %c0_i32_0 = arith.constant 0 : i32
    %c0_i32_1 = arith.constant 0 : i32
    return %c0_i32, %c0_i32_0 : i32, i32
  }
  func.func @transform_10(%arg0: i32) -> (i32, i32) {
    %c0_i32 = arith.constant 0 : i32
    %c0_i32_0 = arith.constant 0 : i32
    %c0_i32_1 = arith.constant 0 : i32
    return %c0_i32, %c0_i32_0 : i32, i32
  }
  func.func @transform_11(%arg0: i32) -> (i32, i32) {
    %c0_i32 = arith.constant 0 : i32
    %c0_i32_0 = arith.constant 0 : i32
    %c0_i32_1 = arith.constant 0 : i32
    return %c0_i32, %c0_i32_0 : i32, i32
  }
  func.func @transform_12(%arg0: i32) -> (i32, i32) {
    %c0_i32 = arith.constant 0 : i32
    %c0_i32_0 = arith.constant 0 : i32
    %c0_i32_1 = arith.constant 0 : i32
    return %c0_i32, %c0_i32_0 : i32, i32
  }
  func.func @transform_13(%arg0: i32) -> (i32, i32) {
    %c0_i32 = arith.constant 0 : i32
    %c0_i32_0 = arith.constant 0 : i32
    %c0_i32_1 = arith.constant 0 : i32
    return %c0_i32, %c0_i32_0 : i32, i32
  }
  func.func @transform_14(%arg0: i32) -> (i32, i32) {
    %c0_i32 = arith.constant 0 : i32
    %c0_i32_0 = arith.constant 0 : i32
    %c0_i32_1 = arith.constant 0 : i32
    return %c0_i32, %c0_i32_0 : i32, i32
  }
  func.func @transform_15(%arg0: i32) -> (i32, i32) {
    %c0_i32 = arith.constant 0 : i32
    %c0_i32_0 = arith.constant 0 : i32
    %c0_i32_1 = arith.constant 0 : i32
    return %c0_i32, %c0_i32_0 : i32, i32
  }
  func.func @transform_16(%arg0: i32) -> (i32, i32) {
    %c0_i32 = arith.constant 0 : i32
    %c0_i32_0 = arith.constant 0 : i32
    %c0_i32_1 = arith.constant 0 : i32
    return %c0_i32, %c0_i32_0 : i32, i32
  }
  func.func @transform_17(%arg0: i32) -> (i32, i32) {
    %c0_i32 = arith.constant 0 : i32
    %c0_i32_0 = arith.constant 0 : i32
    %c0_i32_1 = arith.constant 0 : i32
    return %c0_i32, %c0_i32_0 : i32, i32
  }
  func.func @transform_18(%arg0: i32) -> (i32, i32) {
    %c0_i32 = arith.constant 0 : i32
    %c0_i32_0 = arith.constant 0 : i32
    %c0_i32_1 = arith.constant 0 : i32
    return %c0_i32, %c0_i32_0 : i32, i32
  }
  func.func @transform_19(%arg0: i32) -> (i32, i32) {
    %c0_i32 = arith.constant 0 : i32
    %c0_i32_0 = arith.constant 0 : i32
    %c0_i32_1 = arith.constant 0 : i32
    return %c0_i32, %c0_i32_0 : i32, i32
  }
  func.func @transform_20(%arg0: i32) -> (i32, i32) {
    %c0_i32 = arith.constant 0 : i32
    %c0_i32_0 = arith.constant 0 : i32
    %c0_i32_1 = arith.constant 0 : i32
    return %c0_i32, %c0_i32_0 : i32, i32
  }
  func.func @transform_21(%arg0: i32) -> (i32, i32) {
    %c0_i32 = arith.constant 0 : i32
    %c0_i32_0 = arith.constant 0 : i32
    %c0_i32_1 = arith.constant 0 : i32
    return %c0_i32, %c0_i32_0 : i32, i32
  }
  func.func @transform_22(%arg0: i32) -> (i32, i32) {
    %c0_i32 = arith.constant 0 : i32
    %c0_i32_0 = arith.constant 0 : i32
    return %arg0, %c0_i32 : i32, i32
  }
}

</mosaic_0001>

<bundles_post_ra>
// kernel: transformer_decoder_layer.1
= control target key start
LH: loop header
LB: loop body
LE: loop exit
PB: predicated region body
PF: predicated region fallthrough
CT: control target
= control target key end

     0   :  { %s4115_s0 = inlined_call_operand.vmem [shape: f32[16,32], index: 0, kind: input, shape index: {}]   ;;  %s4116_s1 = inlined_call_operand.vmem [shape: f32[16,32], index: 1, kind: input, shape index: {}]   ;;  %s4117_s2 = inlined_call_operand.vmem [shape: f32[32,96], index: 2, kind: input, shape index: {}]   ;;  %s4118_s3 = inlined_call_operand.vmem [shape: f32[1,96], index: 3, kind: input, shape index: {}]   ;;  %s4119_s4 = inlined_call_operand.vmem [shape: f32[32,32], index: 4, kind: input, shape index: {}]   ;;  %s4120_s5 = inlined_call_operand.vmem [shape: f32[1,32], index: 5, kind: input, shape index: {}]   ;;  %s4121_s6 = inlined_call_operand.vmem [shape: f32[1,32], index: 6, kind: input, shape index: {}]   ;;  %s4122_s7 = inlined_call_operand.vmem [shape: f32[1,32], index: 7, kind: input, shape index: {}]   ;;  %s4123_s8 = inlined_call_operand.vmem [shape: f32[32,32], index: 8, kind: input, shape index: {}]   ;;  %s4124_s9 = inlined_call_operand.hbm [shape: f32[1,32], index: 9, kind: input, shape index: {}]   ;;  %s4125_s10 = inlined_call_operand.vmem [shape: f32[32,64], index: 10, kind: input, shape index: {}]   ;;  %s4126_s11 = inlined_call_operand.hbm [shape: f32[1,64], index: 11, kind: input, shape index: {}]   ;;  %s4127_s12 = inlined_call_operand.vmem [shape: f32[32,32], index: 12, kind: input, shape index: {}]   ;;  %s4128_s13 = inlined_call_operand.hbm [shape: f32[1,32], index: 13, kind: input, shape index: {}]   ;;  %s4129_s14 = inlined_call_operand.vmem [shape: f32[1,32], index: 14, kind: input, shape index: {}]   ;;  %s4130_s15 = inlined_call_operand.vmem [shape: f32[1,32], index: 15, kind: input, shape index: {}]   ;;  %s4131_s16 = inlined_call_operand.hbm [shape: f32[32,64], index: 16, kind: input, shape index: {}]   ;;  %s4132_s17 = inlined_call_operand.vmem [shape: f32[1,64], index: 17, kind: input, shape index: {}]   ;;  %s4133_s18 = inlined_call_operand.vmem [shape: f32[64,32], index: 18, kind: input, shape index: {}]   ;;  %s4134_s19 = inlined_call_operand.vmem [shape: f32[1,32], index: 19, kind: input, shape index: {}]   ;;  %s4135_s20 = inlined_call_operand.vmem [shape: f32[1,32], index: 20, kind: input, shape index: {}]   ;;  %s4136_s21 = inlined_call_operand.vmem [shape: f32[1,32], index: 21, kind: input, shape index: {}]   ;;  %s4137_s22 = inlined_call_operand.vmem [shape: f32[16,32], index: 22, kind: output, shape index: {}]  }
   0x1   :  { %4141 = sst [smem:[#allocation13_spill]] %s4115_s0 }
   0x2   :  { %4142 = sst [smem:[#allocation14_spill]] %s4116_s1 }
   0x3   :  { %4143 = sst [smem:[#allocation15_spill]] %s4117_s2 }
   0x4   :  { %4144 = sst [smem:[#allocation16_spill]] %s4118_s3 }
   0x5   :  { %4145 = sst [smem:[#allocation17_spill]] %s4119_s4 }
   0x6   :  { %4146 = sst [smem:[#allocation18_spill]] %s4120_s5 }
   0x7   :  { %4147 = sst [smem:[#allocation19_spill]] %s4121_s6 }
   0x8   :  { %4148 = sst [smem:[#allocation20_spill]] %s4136_s21 }
   0x9   :  { %4149 = sst [smem:[#allocation21_spill]] %s4137_s22 }
   0xa   :  { %27 = vsyncpa [#allocation3], 0 }
   0xb   :  { %28 = vsyncpa [#allocation5], 0 }
   0xc   :  { %29 = vsyncpa [#allocation8], 0  ;;  %s3635_s3 = smov 0  }
   0xd LB: > { %4150 = sst [smem:[#allocation12_spill]] %s3506_s3  ;;  %s3508_s28 = smov [#allocation4]   ;;  %s3506_s3 = sphi %s3635_s3, %s35_s3  }
   0xe   : > { %s586_s29 = sshll.u32 %s3508_s28, 4  ;;  %s3641_s30 = sadd.s32 4294967295, %s3506_s3   ;;  %s3646_s29 = int_to_ptr.vmem [resolvable:$true] %s586_s29 }
   0xf   : > { %p2921_p0 = scmp.ge.s32.totalorder %s3506_s3, 1  ;;  %p538_p1 = scmp.lt.s32.totalorder %s3506_s3, 3 }
  0x10   : > { %p3310_p2 = scmp.eq.s32.totalorder %s3641_s30, 0  ;;  %s3509_s0 = smov [#allocation2]  }
  0x11   : > { %p3648_p3 = pnand %p2921_p0, %p538_p1  ;;  %s572_s23 = sshll.u32 %s3509_s0, 4  ;;  %s3654_s23 = int_to_ptr.vmem [resolvable:$true] %s572_s23 }
  0x12   : > { %s3510_s1 = smov [#allocation6]   ;;  %s3511_s6 = smov [#allocation7]  }
  0x13   : > { %p3297_p4 = pneg %p3648_p3  ;;  %s600_s5 = sshll.u32 %s3510_s1, 4  ;;  %s3662_s5 = int_to_ptr.vmem [resolvable:$true] %s600_s5 }
  0x14   : > { %s616_s25 = sshll.u32 %s3511_s6, 4  ;;  %s3376_s27 = scalar_lea.hbm %s4126_s11, 16  ;;  %s3664_s25 = int_to_ptr.vmem [resolvable:$true] %s616_s25 }
  0x15   : > { %p3658_p5 = pnand %p3310_p2, %p3297_p4  ;;  %p3377_p6 = scmp.ne.s32.totalorder %s4126_s11, %s3376_s27 }
  0x16   : > { %p3383_p10 = scmp.lt.u32.totalorder %s3376_s27, %s4126_s11 }
  0x17   : > { %p3674_p7 = pneg %p3658_p5 }
  0x19   : > { %p3379_p8 = pnand %p3674_p7, %p3377_p6 }
  0x1b   : > { %p3380_p9 = pneg %p3379_p8 }
  0x1d   : > { %p3385_p11 = pnand %p3383_p10, %p3380_p9 }
  0x1f   : > { %3388 = shalt.err (!%p3385_p11)
}
  0x20   : > { %s3389_s26 = scalar_lea.vmem %s3646_s29, 16  ;;  %s3396_s2 = scalar_lea.vmem %s3646_s29, 32 }
  0x21   : > { %p3390_p12 = scmp.ne.s32.totalorder %s3646_s29, %s3389_s26  ;;  %p3397_p1 = scmp.lt.s32.totalorder %s3646_s29, %s3646_s29 }
  0x22   : > { %p3398_p4 = scmp.lt.s32.totalorder %s3396_s2, %s3389_s26 }
  0x23   : > { %p3392_p13 = pnand %p3390_p12, %p3674_p7 }
  0x24   : > { %p3399_p6 = por %p3398_p4, %p3397_p1 }
  0x25   : > { %p3393_p0 = pneg %p3392_p13 }
  0x27   : > { %p3400_p8 = pnand %p3399_p6, %p3393_p0 }
  0x29   : > { %3403 = shalt.err (!%p3400_p8)
}
  0x2a   : > { %3303 = dma.hbm_to_vmem [thread:$0]  (!%p3658_p5), %s4126_s11, 16, %s3646_s29, [#allocation5]  }
  0x2b   : > { %s3404_s6 = scalar_lea.hbm %s4124_s9, 16 }
  0x2c   : > { %p3405_p9 = scmp.ne.s32.totalorder %s4124_s9, %s3404_s6  ;;  %p3411_p12 = scmp.lt.u32.totalorder %s3404_s6, %s4124_s9 }
  0x2e   : > { %p3407_p10 = pnand %p3405_p9, %p3674_p7 }
  0x30   : > { %p3408_p11 = pneg %p3407_p10 }
  0x32   : > { %p3413_p13 = pnand %p3411_p12, %p3408_p11 }
  0x34   : > { %3416 = shalt.err (!%p3413_p13)
}
  0x35   : > { %s3417_s29 = scalar_lea.vmem %s3654_s23, 16  ;;  %s3424_s21 = scalar_lea.vmem %s3654_s23, 32 }
  0x36   : > { %p3418_p0 = scmp.ne.s32.totalorder %s3654_s23, %s3417_s29  ;;  %p3425_p6 = scmp.lt.s32.totalorder %s3654_s23, %s3654_s23 }
  0x37   : > { %p3426_p8 = scmp.lt.s32.totalorder %s3424_s21, %s3417_s29 }
  0x38   : > { %p3420_p1 = pnand %p3418_p0, %p3674_p7 }
  0x39   : > { %p3427_p9 = por %p3426_p8, %p3425_p6 }
  0x3a   : > { %p3421_p4 = pneg %p3420_p1 }
  0x3c   : > { %p3428_p10 = pnand %p3427_p9, %p3421_p4 }
  0x3e   : > { %3431 = shalt.err (!%p3428_p10)
}
  0x3f   : > { %3300 = dma.hbm_to_vmem [thread:$0]  (!%p3658_p5), %s4124_s9, 16, %s3654_s23, [#allocation3]  }
  0x40   : > { %s3432_s0 = scalar_lea.hbm %s4128_s13, 16 }
  0x41   : > { %p3433_p11 = scmp.ne.s32.totalorder %s4128_s13, %s3432_s0  ;;  %p3439_p0 = scmp.lt.u32.totalorder %s3432_s0, %s4128_s13 }
  0x43   : > { %p3435_p12 = pnand %p3433_p11, %p3674_p7 }
  0x45   : > { %p3436_p13 = pneg %p3435_p12 }
  0x47   : > { %p3441_p1 = pnand %p3439_p0, %p3436_p13 }
  0x49   : > { %3444 = shalt.err (!%p3441_p1)
}
  0x4a   : > { %s3445_s23 = scalar_lea.vmem %s3662_s5, 16  ;;  %s3452_s21 = scalar_lea.vmem %s3662_s5, 32 }
  0x4b   : > { %p3446_p4 = scmp.ne.s32.totalorder %s3662_s5, %s3445_s23  ;;  %p3453_p9 = scmp.lt.s32.totalorder %s3662_s5, %s3662_s5 }
  0x4c   : > { %p3454_p10 = scmp.lt.s32.totalorder %s3452_s21, %s3445_s23 }
  0x4d   : > { %p3448_p6 = pnand %p3446_p4, %p3674_p7 }
  0x4e   : > { %p3455_p11 = por %p3454_p10, %p3453_p9 }
  0x4f   : > { %p3449_p8 = pneg %p3448_p6 }
  0x51   : > { %p3456_p12 = pnand %p3455_p11, %p3449_p8 }
  0x53   : > { %3459 = shalt.err (!%p3456_p12)
}
  0x54   : > { %3306 = dma.hbm_to_vmem [thread:$0]  (!%p3658_p5), %s4128_s13, 16, %s3662_s5, [#allocation5]  }
  0x55   : > { %s3460_s0 = scalar_lea.hbm %s4131_s16, 512 }
  0x56   : > { %p3461_p13 = scmp.ne.s32.totalorder %s4131_s16, %s3460_s0  ;;  %p3467_p4 = scmp.lt.u32.totalorder %s3460_s0, %s4131_s16 }
  0x58   : > { %p3463_p0 = pnand %p3461_p13, %p3674_p7 }
  0x5a   : > { %p3464_p1 = pneg %p3463_p0 }
  0x5c   : > { %p3469_p6 = pnand %p3467_p4, %p3464_p1 }
  0x5e   : > { %3472 = shalt.err (!%p3469_p6)
}
  0x5f   : > { %s3473_s5 = scalar_lea.vmem %s3664_s25, 512  ;;  %p3481_p11 = scmp.lt.s32.totalorder %s3664_s25, %s3664_s25 }
  0x60   : > { %p3474_p8 = scmp.ne.s32.totalorder %s3664_s25, %s3473_s5  ;;  %p3482_p12 = scmp.lt.s32.totalorder %s3473_s5, %s3473_s5 }
  0x62   : > { %p3476_p9 = pnand %p3474_p8, %p3674_p7  ;;  %p3483_p13 = por %p3482_p12, %p3481_p11 }
  0x64   : > { %p3477_p10 = pneg %p3476_p9 }
  0x66   : > { %p3484_p0 = pnand %p3483_p13, %p3477_p10 }
  0x68   : > { %3487 = shalt.err (!%p3484_p0)
}
  0x69   : > { %s3512_s23 = smov 128   ;;  %s3513_s21 = smov 8  }
  0x6a   : > { %3309 = dma.hbm_to_vmem [thread:$0]  (!%p3658_p5), %s4131_s16, 512, %s3664_s25, [#allocation8], %s3512_s23, %s3512_s23, %s3513_s21  }
  0x6b   : > { %661 = sbr.rel (%p3648_p3) target bundleno = 4082 (0xff2), region = 108 }
  0x72   : > { %3493 = dma.done.wait (%p3310_p2), [#allocation3], 16  }
  0x73   : > { %3495 = vsyncadd (%p3310_p2), [#allocation3], 4294967280 }
  0x74   : > { %3497 = dma.done.wait (%p3310_p2), [#allocation5], 32  }
  0x75   : > { %3499 = vsyncadd (%p3310_p2), [#allocation5], 4294967264 }
  0x76   : > { %3501 = dma.done.wait (%p3310_p2), [#allocation8], 512  }
  0x77   : > { %3503 = vsyncadd (%p3310_p2), [#allocation8], 4294966784  ;;  %p737_p3 = scmp.lt.s32.totalorder %s3641_s30, 1  ;;  %v751_v0 = vlaneseq  ;;  %v3514_v1 = vmov 0.0|0.0   ;;  %vm3515_vm0 = vmmov 0   ;;  %v3516_v2 = vmov 0.0  }
  0x78   : > { %3221 = vmatprep.subr.bf16.mxu0 %v3514_v1  ;;  %3064 = vmatprep.mubr.msk.f32.mxu0 %vm3515_vm0, %v3516_v2  ;;  %s4154_s25 = sld [smem:[#allocation15_spill]]  ;;  %s3517_s6 = smov 64   ;;  %vm764_vm8 = vcmask 261120   ;;  %vm923_vm12 = vcmask 64512   ;;  %vm2708_vm13 = vcmask 523264  }
  0x79   : > { %v752_v3 = vand.u32 127, %v751_v0  ;;  %3072 = vmatprep.subr.mxu1 %v3516_v2  ;;  %3074 = vmatprep.mubr.msk.f32.mxu1 %vm3515_vm0, %v3516_v2  ;;  %s4165_s30 = smov (!%p737_p3, %s3641_s30), 1  ;;  %s4155_s21 = sld [smem:[#allocation13_spill]] }
  0x7a   : > { %s3806_s29 = sshll.u32 %s4165_s30, 3  ;;  %s4156_s4 = sld [smem:[#allocation16_spill]] }
  0x7b   : > { %vm940_vm1 = vcmp.ge.s32.totalorder %v752_v3, 8  ;;  %vm941_vm2 = vcmp.lt.s32.totalorder %v752_v3, 16  ;;  %vm839_vm4 = vcmp.lt.s32.totalorder %v752_v3, 8  ;;  %vm1190_vm5 = vcmp.ge.s32.totalorder %v752_v3, 16  ;;  %s3518_s24 = smov 96   ;;  %s4157_s28 = sld [smem:[#allocation17_spill]] }
  0x7c   : > { %vm942_vm3 = vmand %vm940_vm1, %vm941_vm2  ;;  %vm1191_vm6 = vcmp.lt.s32.totalorder %v752_v3, 24  ;;  %v3809_v10 = vsel %vm839_vm4, 1.0, %v3516_v2  ;;  %vm1364_vm9 = vcmp.ge.s32.totalorder %v752_v3, 24  ;;  %vm1365_vm10 = vcmp.lt.s32.totalorder %v752_v3, 32  ;;  %s4158_s30 = sld [smem:[#allocation18_spill]]  ;;  %s4159_s26 = sld [smem:[#allocation14_spill]] }
  0x7d   : > { %v3790_v4 = vsel %vm942_vm3, 1.0, %v3516_v2  ;;  %vm1192_vm7 = vmand %vm1190_vm5, %vm1191_vm6 }
  0x7e   : > { %v753_v5 = vld [vmem:[%s4154_s25] sm:$0xff]  ;;  %v754_v6 = vld [vmem:[%s4154_s25 + $0x8] sm:$0xff]  ;;  %v755_v7 = vld [vmem:[%s4154_s25 + $0x10] sm:$0xff]  ;;  %1032 = vrot.lane.b32.xlu1 %v3790_v4, %s3517_s6  ;;  %v3819_v12 = vsel %vm1192_vm7, 1.0, %v3516_v2 }
  0x7f   : > { %v3222_v8 = vpack.c.bf16 %v754_v6, %v753_v5  ;;  %v756_v9 = vld [vmem:[%s4154_s25 + $0x18] sm:$0xff]  ;;  %s740_s22 = scalar_lea.vmem %s4155_s21, %s3806_s29  ;;  %vm1366_vm11 = vmand %vm1364_vm9, %vm1365_vm10  ;;  %s4160_s21 = sld [smem:[#allocation19_spill]] }
  0x80   : > { %v3225_v11 = vpack.c.bf16 %v756_v9, %v755_v7  ;;  %v3821_v13 = vld [vmem:[%s740_s22] sm:$0xff]  ;;  %v3856_v22 = vsel %vm1366_vm11, 1.0, %v3516_v2 }
  0x81   : > { %3223 = vmatpush3.bf16.msra.mxu0 %v3222_v8  ;;  %v2935_v14 = vld [vmem:[%s4156_s4] ss:$0 sm:$0xff]  ;;  %v1539_v9 = vld [vmem:[%s4157_s28 + $0x8] sm:$0xff] }
  0x82   : > { %3224 = vmatprep.subr.bf16.mxu0 %v3514_v1  ;;  %936 = vrot.lane.b32.xlu1 %v3809_v10, %s3517_s6  ;;  %v1538_v8 = vld [vmem:[%s4157_s28] sm:$0xff]  ;;  %s744_s2 = scalar_lea.vmem %s4159_s26, %s3806_s29 }
  0x85   : > { %3226 = vmatpush3.bf16.msra.mxu0 %v3225_v11  ;;  %v1540_v11 = vld [vmem:[%s4157_s28 + $0x10] sm:$0xff] }
  0x86   : > { %1282 = vrot.lane.b32.xlu1 %v3819_v12, %s3517_s6  ;;  %3067 = vmatprep.subr.mxu0 %v3516_v2 }
  0x88   : > { %3065 = vmatmul.mubr.msk.f32.vlgmr.msra.gmra.mrb[0].mxu0 %vm764_vm8, %v3821_v13 }
  0x89   : > { %3069 = vmatprep.mubr.msk.f32.mxu0 %vm3515_vm0, %v3516_v2 }
  0xf0   : > { %v1033_v40 = vpop.permute.xlu1 %1032 }
  0xf4   : > { %v937_v42 = vpop.permute.xlu1 %936 }
  0xf8   : > { %v1283_v43 = vpop.permute.xlu1 %1282 }
 0x15b   : > { %v834_v15 = vpop.f32.mrb[0].mxu0 }
 0x15c   : > { %v3833_v16 = vadd.f32 %v2935_v14, %v834_v15  ;;  %v3066_v17 = vpop.f32.mrb[1].mxu0  ;;  %v3228_v14 = vpack.c.bf16 %v1539_v9, %v1538_v8  ;;  %v1541_v15 = vld [vmem:[%s4157_s28 + $0x18] sm:$0xff] }
 0x15e   : > { %845 = vrot.lane.b32.xlu0 %v3833_v16, %s3518_s24  ;;  %v843_v19 = vmul.f32 %v3809_v10, %v3833_v16  ;;  %v945_v20 = vmul.f32 %v3790_v4, %v3833_v16  ;;  %v1195_v21 = vmul.f32 %v3819_v12, %v3833_v16  ;;  %v1369_v23 = vmul.f32 %v3856_v22, %v3833_v16 }
 0x15f   : > { %v1035_v41 = vmul.f32 %v1033_v40, %v3833_v16  ;;  %v1285_v57 = vmul.f32 %v1283_v43, %v3833_v16  ;;  %v939_v58 = vmul.f32 %v937_v42, %v3833_v16 }
 0x1d0   : > { %v846_v18 = vpop.permute.xlu0 %845 }
 0x1d1   : > { %3068 = vmatpush3.xpose.msk.msra.mxu0 %vm764_vm8, %v846_v18  ;;  %3073 = vmatpush3.xpose.msk.msra.mxu1 %vm764_vm8, %v846_v18 }
 0x1d2   : > { %3087 = vmatprep.subr.mxu1 %v3516_v2  ;;  %3077 = vmatprep.subr.mxu0 %v3516_v2 }
 0x1d4   : > { %3070 = vmatmul.mubr.msk.f32.vlgmr.msra.gmra.mrb[2].mxu0 %vm764_vm8, %v843_v19  ;;  %3075 = vmatmul.mubr.msk.f32.vlgmr.msra.gmra.mrb[0].mxu1 %vm764_vm8, %v945_v20 }
 0x1d5   : > { %3088 = vmatpush3.xpose.msk.msra.mxu1 %vm764_vm8, %v846_v18  ;;  %3089 = vmatprep.mubr.msk.f32.mxu1 %vm3515_vm0, %v3516_v2 }
 0x1d6   : > { %3097 = vmatprep.subr.mxu1 %v3516_v2  ;;  %3079 = vmatprep.mubr.msk.f32.mxu0 %vm3515_vm0, %v3516_v2 }
 0x1d8   : > { %3090 = vmatmul.mubr.msk.f32.vlgmr.msra.gmra.mrb[2].mxu1 %vm764_vm8, %v1195_v21 }
 0x1d9   : > { %3098 = vmatpush3.xpose.msk.msra.mxu1 %vm764_vm8, %v846_v18  ;;  %3099 = vmatprep.mubr.msk.f32.mxu1 %vm3515_vm0, %v3516_v2 }
 0x1da   : > { %3227 = vmatprep.subr.bf16.mxu1 %v3514_v1 }
 0x1dc   : > { %3100 = vmatmul.mubr.msk.f32.vlgmr.msra.gmra.mrb[4].mxu1 %vm764_vm8, %v1369_v23 }
 0x1dd   : > { %3115 = vmatprep.mubr.msk.f32.mxu1 %vm3515_vm0, %v3516_v2  ;;  %3229 = vmatpush3.bf16.msra.mxu1 %v3228_v14 }
 0x1de   : > { %3230 = vmatprep.subr.bf16.mxu1 %v3514_v1 }
 0x2a7   : > { %v918_v24 = vpop.f32.mrb[2].mxu0  ;;  %v1015_v25 = vpop.f32.mrb[0].mxu1 }
 0x2a8   : > { %v922_v26 = vmul.f32 0.35355338, %v918_v24  ;;  %v1019_v27 = vmul.f32 0.35355338, %v1015_v25  ;;  %v3071_v28 = vpop.f32.mrb[3].mxu0  ;;  %v3076_v29 = vpop.f32.mrb[1].mxu1 }
 0x2aa   : > { %v1020_v30 = vsel %vm923_vm12, %v1019_v27, -inf  ;;  %v924_v31 = vsel %vm923_vm12, %v922_v26, -inf }
 0x2ab   : > { %1021 = vmax.xlane.f32.xlu0 %v1020_v30  ;;  %v1265_v32 = vpop.f32.mrb[2].mxu1  ;;  %925 = vmax.xlane.f32.xlu1 %v924_v31 }
 0x2ac   : > { %v1269_v33 = vmul.f32 0.35355338, %v1265_v32  ;;  %v3091_v34 = vpop.f32.mrb[3].mxu1 }
 0x2ae   : > { %v1270_v35 = vsel %vm923_vm12, %v1269_v33, -inf }
 0x2af   : > { %v1439_v36 = vpop.f32.mrb[4].mxu1  ;;  %1271 = vmax.xlane.f32.xlu1 %v1270_v35  ;;  %v2953_v35 = vld [vmem:[%s4158_s30] ss:$0 sm:$0xff]  ;;  %s3519_s30 = smov 32  }
 0x2b0   : > { %v1443_v37 = vmul.f32 0.35355338, %v1439_v36  ;;  %v3101_v38 = vpop.f32.mrb[5].mxu1 }
 0x2b2   : > { %v1444_v39 = vsel %vm923_vm12, %v1443_v37, -inf }
 0x2b3   : > { %1445 = vmax.xlane.f32.xlu1 %v1444_v39 }
 0x2c1   : > { %1456 = vrot.lane.b32.xlu0 %v3856_v22, %s3517_s6 }
 0x2c4   : > { %1037 = vrot.lane.b32.xlu1 %v1035_v41, %s3517_s6 }
 0x338   : > { %v1022_v44 = vpop.xlane.xlu0 %1021  ;;  %v926_v45 = vpop.xlane.xlu1 %925 }
 0x339   : > { %v1023_v46 = vsub.f32 %v1019_v27, %v1022_v44  ;;  %v927_v47 = vsub.f32 %v922_v26, %v926_v45 }
 0x33b   : > { %v1024_v48 = vmul.f32 1.442695, %v1023_v46  ;;  %v928_v49 = vmul.f32 1.442695, %v927_v47  ;;  %v1737_v46 = vld [vmem:[%s4125_s10] sm:$0xff]  ;;  %v1738_v47 = vld [vmem:[%s4125_s10 + $0x8] sm:$0xff] }
 0x33c   : > { %v1272_v50 = vpop.xlane.xlu1 %1271  ;;  %v1457_v6 = vpop.permute.xlu0 %1456 }
 0x33d   : > { %3338 = vpow2.f32 %v1024_v48  ;;  %v1273_v59 = vsub.f32 %v1269_v33, %v1272_v50  ;;  %v1459_v7 = vmul.f32 %v1457_v6, %v3833_v16  ;;  %v3231_v16 = vpack.c.bf16 %v1541_v15, %v1540_v11  ;;  %v1653_v48 = vld [vmem:[%s4123_s8] sm:$0xff] }
 0x33e   : > { %3340 = vpow2.f32 %v928_v49  ;;  %v1654_v49 = vld [vmem:[%s4123_s8 + $0x8] sm:$0xff]  ;;  %v2959_v6 = vld [vmem:[#allocation4] ss:$0 sm:$0xff]  ;;  %v2957_v11 = vld [vmem:[#allocation2] ss:$0 sm:$0xff] }
 0x33f   : > { %v1274_v60 = vmul.f32 1.442695, %v1273_v59  ;;  %3232 = vmatpush3.bf16.msra.mxu1 %v3231_v16  ;;  %v3234_v50 = vpack.c.bf16 %v1654_v49, %v1653_v48 }
 0x340   : > { %v1446_v51 = vpop.xlane.xlu1 %1445  ;;  %3239 = vmatprep.subr.bf16.mxu1 %v3514_v1 }
 0x341   : > { %v1447_v61 = vsub.f32 %v1443_v37, %v1446_v51  ;;  %3342 = vpow2.f32 %v1274_v60  ;;  %v1739_v51 = vld [vmem:[%s4125_s10 + $0x10] sm:$0xff] }
 0x343   : > { %v1448_v62 = vmul.f32 1.442695, %v1447_v61 }
 0x344   : > { %v1038_v52 = vpop.permute.xlu1 %1037 }
 0x345   : > { %3078 = vmatpush3.msra.mxu0 %v1038_v52  ;;  %3344 = vpow2.f32 %v1448_v62  ;;  %v1740_v52 = vld [vmem:[%s4125_s10 + $0x18] sm:$0xff]  ;;  %v2955_v62 = vld [vmem:[%s4160_s21] ss:$0 sm:$0xff] }
 0x346   : > { %3082 = vmatprep.subr.mxu0 %v3516_v2 }
 0x347   : > { %v3339_v53 = vpop.eup %3338 }
 0x348   : > { %v3341_v54 = vpop.eup %3340  ;;  %v1026_v55 = vsel %vm923_vm12, %v3339_v53, 0.0 }
 0x349   : > { %1027 = vadd.xlane.f32.xlu1 %v1026_v55  ;;  %v930_v56 = vsel %vm923_vm12, %v3341_v54, 0.0  ;;  %v1656_v55 = vld [vmem:[%s4123_s8 + $0x18] sm:$0xff] }
 0x34a   : > { %931 = vadd.xlane.f32.xlu0 %v930_v56 }
 0x34b   : > { %v3343_v63 = vpop.eup %3342 }
 0x34c   : > { %v1276_v0 = vsel %vm923_vm12, %v3343_v63, 0.0 }
 0x34f   : > { %v3345_v3 = vpop.eup %3344 }
 0x350   : > { %v1450_v5 = vsel %vm923_vm12, %v3345_v3, 0.0 }
 0x35a   : > { %1287 = vrot.lane.b32.xlu1 %v1285_v57, %s3517_s6  ;;  %v750_v57 = vld [vmem:[%s744_s2] sm:$0xff] }
 0x360   : > { %1114 = vrot.lane.b32.xlu0 %v939_v58, %s3517_s6 }
 0x37e   : > { %1277 = vadd.xlane.f32.xlu1 %v1276_v0  ;;  %v2956_v0 = vld [vmem:[%s4122_s7] ss:$0 sm:$0xff] }
 0x382   : > { %1451 = vadd.xlane.f32.xlu1 %v1450_v5 }
 0x393   : > { %1461 = vrot.lane.b32.xlu1 %v1459_v7, %s3517_s6  ;;  %s4162_s6 = sld [smem:[#allocation21_spill]] }
 0x399   : > { %s748_s22 = scalar_lea.vmem %s4162_s6, %s3806_s29 }
 0x3d6   : > { %v1028_v17 = vpop.xlane.xlu1 %1027 }
 0x3d7   : > { %3346 = vrcp.f32 %v1028_v17  ;;  %v932_v18 = vpop.xlane.xlu0 %931 }
 0x3d8   : > { %3348 = vrcp.f32 %v932_v18 }
 0x3da   : > { %v1288_v25 = vpop.permute.xlu1 %1287 }
 0x3db   : > { %v1115_v21 = vpop.permute.xlu0 %1114 }
 0x3e1   : > { %v3347_v19 = vpop.eup %3346 }
 0x3e2   : > { %v1030_v20 = vmul.f32 %v3347_v19, %v3339_v53  ;;  %v3349_v23 = vpop.eup %3348  ;;  %v3243_v53 = vpack.c.bf16 %v1740_v52, %v1739_v51 }
 0x3e3   : > { %v934_v24 = vmul.f32 %v3349_v23, %v3341_v54  ;;  %v1655_v54 = vld [vmem:[%s4123_s8 + $0x10] sm:$0xff] }
 0x3e4   : > { %3080 = vmatmul.mubr.msk.f32.vlgmr.msra.gmra.mrb[4].mxu0 %vm923_vm12, %v1030_v20  ;;  %v3237_v56 = vpack.c.bf16 %v1656_v55, %v1655_v54 }
 0x3e5   : > { %3083 = vmatpush3.msra.mxu0 %v1115_v21  ;;  %3084 = vmatprep.mubr.msk.f32.mxu0 %vm3515_vm0, %v3516_v2 }
 0x3e6   : > { %3092 = vmatprep.subr.mxu0 %v3516_v2 }
 0x3ec   : > { %3085 = vmatmul.mubr.msk.f32.vlgmr.msra.gmra.mrb[4].mxu0 %vm923_vm12, %v934_v24 }
 0x3ed   : > { %3093 = vmatpush3.msra.mxu0 %v1288_v25  ;;  %3094 = vmatprep.mubr.msk.f32.mxu0 %vm3515_vm0, %v3516_v2 }
 0x3ee   : > { %3102 = vmatprep.subr.mxu0 %v3516_v2 }
 0x40b   : > { %v1278_v26 = vpop.xlane.xlu1 %1277 }
 0x40c   : > { %3350 = vrcp.f32 %v1278_v26 }
 0x40f   : > { %v1452_v27 = vpop.xlane.xlu1 %1451 }
 0x410   : > { %3352 = vrcp.f32 %v1452_v27 }
 0x413   : > { %v1462_v30 = vpop.permute.xlu1 %1461 }
 0x416   : > { %v3351_v28 = vpop.eup %3350 }
 0x417   : > { %v1280_v29 = vmul.f32 %v3351_v28, %v3343_v63 }
 0x419   : > { %3095 = vmatmul.mubr.msk.f32.vlgmr.msra.gmra.mrb[4].mxu0 %vm923_vm12, %v1280_v29 }
 0x41a   : > { %3103 = vmatpush3.msra.mxu0 %v1462_v30  ;;  %3104 = vmatprep.mubr.msk.f32.mxu0 %vm3515_vm0, %v3516_v2  ;;  %v3353_v31 = vpop.eup %3352 }
 0x41b   : > { %3233 = vmatprep.subr.bf16.mxu0 %v3514_v1  ;;  %v1454_v32 = vmul.f32 %v3353_v31, %v3345_v3 }
 0x421   : > { %3105 = vmatmul.mubr.msk.f32.vlgmr.msra.gmra.mrb[4].mxu0 %vm923_vm12, %v1454_v32 }
 0x422   : > { %3126 = vmatprep.mubr.msk.f32.mxu0 %vm3515_vm0, %v3516_v2  ;;  %3235 = vmatpush3.bf16.msra.mxu0 %v3234_v50 }
 0x423   : > { %3236 = vmatprep.subr.bf16.mxu0 %v3514_v1 }
 0x426   : > { %3238 = vmatpush3.bf16.msra.mxu0 %v3237_v56 }
 0x427   : > { %3140 = vmatprep.subr.mxu0 %v3516_v2 }
 0x4f4   : > { %v1533_v33 = vpop.f32.mrb[4].mxu0 }
 0x4f5   : > { %v3106_v34 = vpop.f32.mrb[5].mxu0  ;;  %3116 = vmatmul.mubr.msk.f32.vlgmr.msra.gmra.mrb[6].mxu1 %vm764_vm8, %v1533_v33 }
 0x4f6   : > { %3137 = vmatprep.mubr.msk.f32.mxu1 %vm3515_vm0, %v3516_v2 }
 0x5c8   : > { %v1618_v36 = vpop.f32.mrb[6].mxu1 }
 0x5c9   : > { %v1619_v37 = vadd.f32 %v2953_v35, %v1618_v36  ;;  %v3117_v38 = vpop.f32.mrb[7].mxu1 }
 0x5cb   : > { %v1622_v39 = vadd.f32 %v1619_v37, %v3821_v13  ;;  %v3240_v13 = vpack.c.bf16 %v1738_v47, %v1737_v46 }
 0x5cd   : > { %v1625_v40 = vsel %vm764_vm8, %v1622_v39, 0.0  ;;  %3241 = vmatpush3.bf16.msra.mxu1 %v3240_v13 }
 0x5ce   : > { %1626 = vadd.xlane.f32.xlu1 %v1625_v40  ;;  %3242 = vmatprep.subr.bf16.mxu1 %v3514_v1 }
 0x5d1   : > { %3244 = vmatpush3.bf16.msra.mxu1 %v3243_v53 }
 0x5d2   : > { %3145 = vmatprep.subr.mxu1 %v3516_v2 }
 0x5d4   : > { %3138 = vmatmul.mubr.msk.f32.vlgmr.msra.gmra.mrb[8].mxu1 %vm764_vm8, %v750_v57 }
 0x5d5   : > { %3147 = vmatprep.mubr.msk.f32.mxu1 %vm3515_vm0, %v3516_v2 }
 0x65b   : > { %v1627_v41 = vpop.xlane.xlu1 %1626 }
 0x65c   : > { %v1629_v42 = vmul.f32 0.03125, %v1627_v41 }
 0x65e   : > { %v1630_v43 = vsub.f32 %v1622_v39, %v1629_v42 }
 0x660   : > { %v1631_v44 = vmul.f32 %v1630_v43, %v1630_v43 }
 0x662   : > { %v1632_v45 = vsel %vm764_vm8, %v1631_v44, 0.0 }
 0x663   : > { %1633 = vadd.xlane.f32.xlu0 %v1632_v45 }
 0x6a7   : > { %v1817_v7 = vpop.f32.mrb[8].mxu1 }
 0x6a8   : > { %v3972_v8 = vadd.f32 %v2959_v6, %v1817_v7  ;;  %v3139_v9 = vpop.f32.mrb[9].mxu1 }
 0x6aa   : > { %3146 = vmatpush3.xpose.msk.msra.mxu1 %vm764_vm8, %v3972_v8 }
 0x6ab   : > { %3160 = vmatprep.subr.mxu1 %v3516_v2 }
 0x6f0   : > { %v1634_v58 = vpop.xlane.xlu0 %1633 }
 0x6f1   : > { %v1635_v59 = vmul.f32 0.03125, %v1634_v58 }
 0x6f3   : > { %v1636_v60 = vadd.f32 1e-05, %v1635_v59 }
 0x6f5   : > { %3354 = vrsqrt.f32 %v1636_v60 }
 0x6ff   : > { %v3355_v61 = vpop.eup %3354 }
 0x700   : > { %v1638_v63 = vmul.f32 %v3355_v61, %v1630_v43  ;;  %v2494_v61 = vld [vmem:[%s4127_s12] sm:$0xff] }
 0x702   : > { %v1645_v3 = vmul.f32 %v2955_v62, %v1638_v63  ;;  %v2495_v62 = vld [vmem:[%s4127_s12 + $0x8] sm:$0xff]  ;;  %v2496_v63 = vld [vmem:[%s4127_s12 + $0x10] sm:$0xff] }
 0x704   : > { %v3966_v5 = vadd.f32 %v2956_v0, %v1645_v3  ;;  %v3246_v0 = vpack.c.bf16 %v2495_v62, %v2494_v61  ;;  %v2497_v3 = vld [vmem:[%s4127_s12 + $0x18] sm:$0xff] }
 0x705   : > { %v3249_v6 = vpack.c.bf16 %v2497_v3, %v2496_v63 }
 0x706   : > { %3127 = vmatmul.mubr.msk.f32.vlgmr.msra.gmra.mrb[6].mxu0 %vm764_vm8, %v3966_v5 }
 0x707   : > { %3142 = vmatprep.mubr.msk.f32.mxu0 %vm3515_vm0, %v3516_v2  ;;  %3141 = vmatpush3.xpose.msk.msra.mxu0 %vm764_vm8, %v3972_v8 }
 0x708   : > { %3150 = vmatprep.subr.mxu0 %v3516_v2 }
 0x7d9   : > { %v1733_v14 = vpop.f32.mrb[6].mxu0 }
 0x7da   : > { %v1734_v15 = vadd.f32 %v2957_v11, %v1733_v14  ;;  %v3128_v16 = vpop.f32.mrb[7].mxu0 }
 0x7dc   : > { %v1821_v17 = vmul.f32 %v3809_v10, %v1734_v15  ;;  %v1914_v18 = vmul.f32 %v3790_v4, %v1734_v15  ;;  %v2158_v19 = vmul.f32 %v3819_v12, %v1734_v15  ;;  %v2326_v20 = vmul.f32 %v3856_v22, %v1734_v15 }
 0x7de   : > { %3143 = vmatmul.mubr.msk.f32.vlgmr.msra.gmra.mrb[8].mxu0 %vm764_vm8, %v1821_v17  ;;  %3148 = vmatmul.mubr.msk.f32.vlgmr.msra.gmra.mrb[10].mxu1 %vm764_vm8, %v1914_v18 }
 0x7df   : > { %3161 = vmatpush3.xpose.msk.msra.mxu1 %vm764_vm8, %v3972_v8  ;;  %3162 = vmatprep.mubr.msk.f32.mxu1 %vm3515_vm0, %v3516_v2 }
 0x7e0   : > { %3170 = vmatprep.subr.mxu1 %v3516_v2  ;;  %3152 = vmatprep.mubr.msk.f32.mxu0 %vm3515_vm0, %v3516_v2 }
 0x7e2   : > { %3163 = vmatmul.mubr.msk.f32.vlgmr.msra.gmra.mrb[12].mxu1 %vm764_vm8, %v2158_v19 }
 0x7e3   : > { %3171 = vmatpush3.xpose.msk.msra.mxu1 %vm764_vm8, %v3972_v8  ;;  %3172 = vmatprep.mubr.msk.f32.mxu1 %vm3515_vm0, %v3516_v2 }
 0x7e4   : > { %3245 = vmatprep.subr.bf16.mxu1 %v3514_v1 }
 0x7e6   : > { %3173 = vmatmul.mubr.msk.f32.vlgmr.msra.gmra.mrb[14].mxu1 %vm764_vm8, %v2326_v20 }
 0x7e7   : > { %3188 = vmatprep.mubr.msk.f32.mxu1 %vm3515_vm0, %v3516_v2  ;;  %3247 = vmatpush3.bf16.msra.mxu1 %v3246_v0  ;;  %v2979_v0 = vld [vmem:[%s4134_s19] ss:$0 sm:$0xff] }
 0x7e8   : > { %3248 = vmatprep.subr.bf16.mxu1 %v3514_v1 }
 0x7eb   : > { %3250 = vmatpush3.bf16.msra.mxu1 %v3249_v6 }
 0x7ec   : > { %3257 = vmatprep.subr.bf16.mxu1 %v3514_v1 }
 0x8b1   : > { %v1894_v21 = vpop.f32.mrb[8].mxu0  ;;  %v1984_v23 = vpop.f32.mrb[10].mxu1 }
 0x8b2   : > { %v1898_v24 = vmul.f32 0.35355338, %v1894_v21  ;;  %v1988_v25 = vmul.f32 0.35355338, %v1984_v23  ;;  %v3144_v26 = vpop.f32.mrb[9].mxu0  ;;  %v3149_v27 = vpop.f32.mrb[11].mxu1 }
 0x8b4   : > { %v1989_v28 = vsel %vm923_vm12, %v1988_v25, -inf  ;;  %v1899_v29 = vsel %vm923_vm12, %v1898_v24, -inf }
 0x8b5   : > { %1990 = vmax.xlane.f32.xlu0 %v1989_v28  ;;  %v2228_v30 = vpop.f32.mrb[12].mxu1  ;;  %1900 = vmax.xlane.f32.xlu1 %v1899_v29  ;;  %v2973_v29 = vld [vmem:[#allocation6] ss:$0 sm:$0xff] }
 0x8b6   : > { %v2232_v31 = vmul.f32 0.35355338, %v2228_v30  ;;  %v3164_v32 = vpop.f32.mrb[13].mxu1 }
 0x8b8   : > { %v2233_v33 = vsel %vm923_vm12, %v2232_v31, -inf }
 0x8b9   : > { %2234 = vmax.xlane.f32.xlu0 %v2233_v33  ;;  %v2396_v34 = vpop.f32.mrb[14].mxu1 }
 0x8ba   : > { %v3174_v35 = vpop.f32.mrb[15].mxu1  ;;  %v2400_v36 = vmul.f32 0.35355338, %v2396_v34 }
 0x8bc   : > { %v2401_v37 = vsel %vm923_vm12, %v2400_v36, -inf }
 0x8c6   : > { %1910 = vrot.lane.b32.xlu1 %v3809_v10, %s3519_s30 }
 0x8cf   : > { %2000 = vrot.lane.b32.xlu0 %v3790_v4, %s3519_s30 }
 0x8d3   : > { %2412 = vrot.lane.b32.xlu0 %v3856_v22, %s3519_s30 }
 0x8ea   : > { %2402 = vmax.xlane.f32.xlu1 %v2401_v37 }
 0x8fb   : > { %2244 = vrot.lane.b32.xlu1 %v3819_v12, %s3519_s30 }
 0x942   : > { %v1991_v38 = vpop.xlane.xlu0 %1990  ;;  %v1901_v39 = vpop.xlane.xlu1 %1900 }
 0x943   : > { %v1992_v40 = vsub.f32 %v1988_v25, %v1991_v38  ;;  %v1902_v41 = vsub.f32 %v1898_v24, %v1901_v39 }
 0x945   : > { %v1993_v42 = vmul.f32 1.442695, %v1992_v40  ;;  %v1903_v43 = vmul.f32 1.442695, %v1902_v41  ;;  %v2608_v40 = vld [vmem:[#allocation7] sm:$0xff]  ;;  %v2609_v41 = vld [vmem:[#allocation7 + $0x8] sm:$0xff] }
 0x946   : > { %v2235_v44 = vpop.xlane.xlu0 %2234  ;;  %v1911_v48 = vpop.permute.xlu1 %1910 }
 0x947   : > { %3356 = vpow2.f32 %v1993_v42  ;;  %v2236_v45 = vsub.f32 %v2232_v31, %v2235_v44  ;;  %v1913_v49 = vmul.f32 %v1911_v48, %v3972_v8  ;;  %v3252_v42 = vpack.c.bf16 %v2609_v41, %v2608_v40 }
 0x948   : > { %3358 = vpow2.f32 %v1903_v43  ;;  %v2611_v43 = vld [vmem:[#allocation7 + $0x18] sm:$0xff] }
 0x949   : > { %v2237_v10 = vmul.f32 1.442695, %v2236_v45  ;;  %v2694_v45 = vld [vmem:[%s4133_s18 + $0x8] sm:$0xff] }
 0x94a   : > { %v2001_v50 = vpop.permute.xlu0 %2000 }
 0x94b   : > { %3360 = vpow2.f32 %v2237_v10  ;;  %v2003_v51 = vmul.f32 %v2001_v50, %v3972_v8  ;;  %v2695_v10 = vld [vmem:[%s4133_s18 + $0x10] sm:$0xff] }
 0x94e   : > { %v2413_v52 = vpop.permute.xlu0 %2412 }
 0x94f   : > { %v2415_v53 = vmul.f32 %v2413_v52, %v3972_v8  ;;  %v2975_v52 = vld [vmem:[%s4129_s14] ss:$0 sm:$0xff] }
 0x951   : > { %v3357_v4 = vpop.eup %3356 }
 0x952   : > { %v3359_v22 = vpop.eup %3358  ;;  %v1995_v46 = vsel %vm923_vm12, %v3357_v4, 0.0 }
 0x953   : > { %1996 = vadd.xlane.f32.xlu1 %v1995_v46  ;;  %v1905_v47 = vsel %vm923_vm12, %v3359_v22, 0.0 }
 0x954   : > { %1906 = vadd.xlane.f32.xlu0 %v1905_v47  ;;  %v2697_v47 = vld [vmem:[%s4133_s18 + $0x20] sm:$0xff] }
 0x955   : > { %v3361_v12 = vpop.eup %3360 }
 0x956   : > { %v2239_v13 = vsel %vm923_vm12, %v3361_v12, 0.0 }
 0x958   : > { %2240 = vadd.xlane.f32.xlu0 %v2239_v13 }
 0x964   : > { %2082 = vrot.lane.b32.xlu1 %v1913_v49, %s3518_s24 }
 0x96e   : > { %2005 = vrot.lane.b32.xlu0 %v2003_v51, %s3518_s24 }
 0x972   : > { %2417 = vrot.lane.b32.xlu0 %v2415_v53, %s3518_s24 }
 0x977   : > { %v2403_v54 = vpop.xlane.xlu1 %2402 }
 0x978   : > { %v2404_v55 = vsub.f32 %v2400_v36, %v2403_v54  ;;  %v2976_v54 = vld [vmem:[%s4130_s15] ss:$0 sm:$0xff] }
 0x97a   : > { %v2405_v56 = vmul.f32 1.442695, %v2404_v55 }
 0x97b   : > { %v2245_v59 = vpop.permute.xlu1 %2244 }
 0x97c   : > { %3362 = vpow2.f32 %v2405_v56  ;;  %v2247_v60 = vmul.f32 %v2245_v59, %v3972_v8  ;;  %v2977_v59 = vld [vmem:[%s4132_s17] ss:$0 sm:$0xff] }
 0x986   : > { %v3363_v57 = vpop.eup %3362 }
 0x987   : > { %v2407_v58 = vsel %vm923_vm12, %v3363_v57, 0.0 }
 0x988   : > { %2408 = vadd.xlane.f32.xlu1 %v2407_v58 }
 0x999   : > { %2249 = vrot.lane.b32.xlu1 %v2247_v60, %s3518_s24  ;;  %s4161_s24 = sld [smem:[#allocation20_spill]] }
 0x9e0   : > { %v1997_v7 = vpop.xlane.xlu1 %1996 }
 0x9e1   : > { %v1907_v8 = vpop.xlane.xlu0 %1906  ;;  %3364 = vrcp.f32 %v1997_v7 }
 0x9e2   : > { %3366 = vrcp.f32 %v1907_v8 }
 0x9e4   : > { %v2083_v16 = vpop.permute.xlu1 %2082 }
 0x9e5   : > { %v2241_v9 = vpop.xlane.xlu0 %2240 }
 0x9e6   : > { %3368 = vrcp.f32 %v2241_v9 }
 0x9e9   : > { %v2006_v11 = vpop.permute.xlu0 %2005 }
 0x9ea   : > { %3151 = vmatpush3.msra.mxu0 %v2006_v11 }
 0x9eb   : > { %v3365_v14 = vpop.eup %3364  ;;  %3155 = vmatprep.subr.mxu0 %v3516_v2 }
 0x9ec   : > { %v1999_v15 = vmul.f32 %v3365_v14, %v3357_v4  ;;  %v3367_v17 = vpop.eup %3366 }
 0x9ed   : > { %v1909_v18 = vmul.f32 %v3367_v17, %v3359_v22  ;;  %v2418_v24 = vpop.permute.xlu0 %2417  ;;  %v2696_v22 = vld [vmem:[%s4133_s18 + $0x18] sm:$0xff] }
 0x9ee   : > { %3153 = vmatmul.mubr.msk.f32.vlgmr.msra.gmra.mrb[10].mxu0 %vm923_vm12, %v1999_v15  ;;  %v3261_v46 = vpack.c.bf16 %v2696_v22, %v2695_v10 }
 0x9ef   : > { %3156 = vmatpush3.msra.mxu0 %v2083_v16  ;;  %3157 = vmatprep.mubr.msk.f32.mxu0 %vm3515_vm0, %v3516_v2 }
 0x9f0   : > { %3165 = vmatprep.subr.mxu0 %v3516_v2  ;;  %v3369_v20 = vpop.eup %3368 }
 0x9f1   : > { %v2243_v21 = vmul.f32 %v3369_v20, %v3361_v12  ;;  %v2698_v12 = vld [vmem:[%s4133_s18 + $0x28] sm:$0xff] }
 0x9f2   : > { %v3264_v13 = vpack.c.bf16 %v2698_v12, %v2697_v47 }
 0x9f6   : > { %3158 = vmatmul.mubr.msk.f32.vlgmr.msra.gmra.mrb[10].mxu0 %vm923_vm12, %v1909_v18 }
 0x9f7   : > { %3167 = vmatprep.mubr.msk.f32.mxu0 %vm3515_vm0, %v3516_v2 }
 0xa15   : > { %v2409_v19 = vpop.xlane.xlu1 %2408 }
 0xa16   : > { %3370 = vrcp.f32 %v2409_v19 }
 0xa19   : > { %v2250_v23 = vpop.permute.xlu1 %2249 }
 0xa1a   : > { %3166 = vmatpush3.msra.mxu0 %v2250_v23  ;;  %v2981_v23 = vld [vmem:[%s4135_s20] ss:$0 sm:$0xff] }
 0xa1b   : > { %3168 = vmatmul.mubr.msk.f32.vlgmr.msra.gmra.mrb[10].mxu0 %vm923_vm12, %v2243_v21  ;;  %3175 = vmatprep.subr.mxu0 %v3516_v2 }
 0xa1c   : > { %3176 = vmatpush3.msra.mxu0 %v2418_v24  ;;  %3177 = vmatprep.mubr.msk.f32.mxu0 %vm3515_vm0, %v3516_v2 }
 0xa1d   : > { %3251 = vmatprep.subr.bf16.mxu0 %v3514_v1 }
 0xa20   : > { %v3371_v25 = vpop.eup %3370 }
 0xa21   : > { %v2411_v26 = vmul.f32 %v3371_v25, %v3363_v57  ;;  %v2700_v57 = vld [vmem:[%s4133_s18 + $0x38] sm:$0xff]  ;;  %v2982_v25 = vld [vmem:[%s4161_s24] ss:$0 sm:$0xff] }
 0xa23   : > { %3178 = vmatmul.mubr.msk.f32.vlgmr.msra.gmra.mrb[10].mxu0 %vm923_vm12, %v2411_v26 }
 0xa24   : > { %3199 = vmatprep.mubr.msk.f32.mxu0 %vm3515_vm0, %v3516_v2  ;;  %3253 = vmatpush3.bf16.msra.mxu0 %v3252_v42 }
 0xa25   : > { %3254 = vmatprep.subr.bf16.mxu0 %v3514_v1 }
 0xaf6   : > { %v2489_v27 = vpop.f32.mrb[10].mxu0 }
 0xaf7   : > { %v3179_v28 = vpop.f32.mrb[11].mxu0  ;;  %3189 = vmatmul.mubr.msk.f32.vlgmr.msra.gmra.mrb[16].mxu1 %vm764_vm8, %v2489_v27 }
 0xaf8   : > { %3218 = vmatprep.mubr.msk.f32.mxu1 %vm3515_vm0, %v3516_v2  ;;  %v2610_v2 = vld [vmem:[#allocation7 + $0x10] sm:$0xff] }
 0xaf9   : > { %v3255_v44 = vpack.c.bf16 %v2611_v43, %v2610_v2 }
 0xafb   : > { %3256 = vmatpush3.bf16.msra.mxu0 %v3255_v44 }
 0xbca   : > { %v2574_v30 = vpop.f32.mrb[16].mxu1 }
 0xbcb   : > { %v2575_v31 = vadd.f32 %v2973_v29, %v2574_v30  ;;  %v3190_v32 = vpop.f32.mrb[17].mxu1 }
 0xbcd   : > { %v2578_v33 = vadd.f32 %v2575_v31, %v3966_v5  ;;  %v2693_v5 = vld [vmem:[%s4133_s18] sm:$0xff] }
 0xbce   : > { %v3258_v4 = vpack.c.bf16 %v2694_v45, %v2693_v5 }
 0xbcf   : > { %v2581_v34 = vsel %vm764_vm8, %v2578_v33, 0.0 }
 0xbd0   : > { %2582 = vadd.xlane.f32.xlu1 %v2581_v34  ;;  %3259 = vmatpush3.bf16.msra.mxu1 %v3258_v4 }
 0xbd1   : > { %3260 = vmatprep.subr.bf16.mxu1 %v3514_v1 }
 0xbd4   : > { %3262 = vmatpush3.bf16.msra.mxu1 %v3261_v46 }
 0xbd5   : > { %3263 = vmatprep.subr.bf16.mxu1 %v3514_v1 }
 0xbd8   : > { %3265 = vmatpush3.bf16.msra.mxu1 %v3264_v13 }
 0xbd9   : > { %3266 = vmatprep.subr.bf16.mxu1 %v3514_v1  ;;  %v2699_v1 = vld [vmem:[%s4133_s18 + $0x30] sm:$0xff] }
 0xbda   : > { %v3267_v58 = vpack.c.bf16 %v2700_v57, %v2699_v1 }
 0xbdc   : > { %3268 = vmatpush3.bf16.msra.mxu1 %v3267_v58 }
 0xc5d   : > { %v2583_v35 = vpop.xlane.xlu1 %2582 }
 0xc5e   : > { %v2584_v36 = vmul.f32 0.03125, %v2583_v35 }
 0xc60   : > { %v2585_v37 = vsub.f32 %v2578_v33, %v2584_v36 }
 0xc62   : > { %v2586_v38 = vmul.f32 %v2585_v37, %v2585_v37 }
 0xc64   : > { %v2587_v39 = vsel %vm764_vm8, %v2586_v38, 0.0 }
 0xc65   : > { %2588 = vadd.xlane.f32.xlu0 %v2587_v39 }
 0xcf2   : > { %v2589_v48 = vpop.xlane.xlu0 %2588 }
 0xcf3   : > { %v2590_v49 = vmul.f32 0.03125, %v2589_v48 }
 0xcf5   : > { %v2591_v50 = vadd.f32 1e-05, %v2590_v49 }
 0xcf7   : > { %3372 = vrsqrt.f32 %v2591_v50 }
 0xd01   : > { %v3373_v51 = vpop.eup %3372 }
 0xd02   : > { %v2593_v53 = vmul.f32 %v3373_v51, %v2585_v37 }
 0xd04   : > { %v2600_v55 = vmul.f32 %v2975_v52, %v2593_v53 }
 0xd06   : > { %v2607_v56 = vadd.f32 %v2976_v54, %v2600_v55 }
 0xd08   : > { %3200 = vmatmul.mubr.msk.f32.vlgmr.msra.gmra.mrb[12].mxu0 %vm764_vm8, %v2607_v56 }
 0xddb   : > { %v2688_v60 = vpop.f32.mrb[12].mxu0 }
 0xddc   : > { %v2689_v61 = vadd.f32 %v2977_v59, %v2688_v60  ;;  %v3201_v62 = vpop.f32.mrb[13].mxu0 }
 0xdde   : > { %v2692_v63 = vmax.f32 %v2689_v61, 0.0 }
 0xde0   : > { %3219 = vmatmul.mubr.msk.f32.vlgmr.msra.gmra.mrb[18].mxu1 %vm2708_vm13, %v2692_v63 }
 0xeb3   : > { %v2778_v3 = vpop.f32.mrb[18].mxu1 }
 0xeb4   : > { %v2779_v6 = vadd.f32 %v2979_v0, %v2778_v3  ;;  %v3220_v7 = vpop.f32.mrb[19].mxu1 }
 0xeb6   : > { %v2782_v8 = vadd.f32 %v2779_v6, %v2607_v56 }
 0xeb8   : > { %v2785_v9 = vsel %vm764_vm8, %v2782_v8, 0.0 }
 0xeb9   : > { %2786 = vadd.xlane.f32.xlu0 %v2785_v9 }
 0xf46   : > { %v2787_v11 = vpop.xlane.xlu0 %2786 }
 0xf47   : > { %v2788_v14 = vmul.f32 0.03125, %v2787_v11 }
 0xf49   : > { %v2789_v15 = vsub.f32 %v2782_v8, %v2788_v14 }
 0xf4b   : > { %v2790_v16 = vmul.f32 %v2789_v15, %v2789_v15 }
 0xf4d   : > { %v2791_v17 = vsel %vm764_vm8, %v2790_v16, 0.0 }
 0xf4e   : > { %2792 = vadd.xlane.f32.xlu1 %v2791_v17 }
 0xfdb   : > { %v2793_v18 = vpop.xlane.xlu1 %2792 }
 0xfdc   : > { %v2794_v19 = vmul.f32 0.03125, %v2793_v18 }
 0xfde   : > { %v2795_v20 = vadd.f32 1e-05, %v2794_v19 }
 0xfe0   : > { %3374 = vrsqrt.f32 %v2795_v20 }
 0xfea   : > { %v3375_v21 = vpop.eup %3374 }
 0xfeb   : > { %v2797_v24 = vmul.f32 %v3375_v21, %v2789_v15 }
 0xfed   : > { %v2804_v26 = vmul.f32 %v2981_v23, %v2797_v24 }
 0xfef   : > { %v2811_v27 = vadd.f32 %v2982_v25, %v2804_v26 }
 0xff1   : > { %2812 = vst.msk [vmem:[%s748_s22] sm:$0xff] %vm764_vm8, %v2811_v27 }
 0xff2 PF: > { %s4163_s30 = sld [smem:[#allocation12_spill]] }
 0xff8   : > { %s35_s3 = sadd.s32 1, %s4163_s30  }
 0xff9   : > { %p32_p2 = scmp.ge.s32.totalorder %s35_s3, 4  }
 0xffb   :  { %34 = sbr.rel (!%p32_p2) target bundleno = 13 (0xd), region = 158 }
0x1002   :  { %2832 = vsyncpa [#allocation3], 1 }
0x1003   :  { %2834 = vsyncpa [#allocation3 + $0x1], 1 }
0x1004   :  { %2835 = vsyncpa [#allocation5], 1 }
0x1005   :  { %2836 = vsyncpa [#allocation8], 1 }

</bundles_post_ra>
